<compile_context>
chip_gen: v5e
topology: v5e:2x2
jax: 0.10.0
libtpu: 0.0.40
codegen_flags: <defaults>
</compile_context>

<pallas_src>
import jax
import jax.numpy as jnp
from jax.experimental import pallas as pl
from jax.experimental.pallas import tpu as pltpu


def _round_up(x, m):
    return -(-x // m) * m


def _build_kernel(L):
    """Kernel closure over the static packing layout L (all Python ints)."""
    d1, d2, nh = L["d1"], L["d2"], L["nh"]
    k_in, n_in = L["k_in"], L["n_in"]
    H, n_pad = L["H"], L["n_pad"]
    c_in, c_blk, c_rc, c_sel = L["c_in"], L["c_blk"], L["c_rc"], L["c_sel"]
    b_in, b_o, b_e1, b_e2 = L["b_in"], L["b_o"], L["b_e1"], L["b_e2"]
    f32, bf16 = jnp.float32, jnp.bfloat16

    def dot(a, w):
        # bf16 operands, f32 accumulation on the MXU.
        return jnp.dot(a.astype(bf16), w, preferred_element_type=f32)

    def kernel(cat_ref, wslab_ref, wcore_ref, we2_ref, bias_ref, out_ref):
        cat = cat_ref[...]

        # --- fused gate pre-activations, columns [h1 | h2 | z1 | z2] (one dot)
        s = dot(cat, wslab_ref[:k_in, c_in:c_in + n_in]) + bias_ref[:, b_in:b_in + n_in]
        h = jax.nn.relu(s[:, :nh])                     # [h1 | h2]
        g = jax.nn.sigmoid(s[:, nh:n_in]) * h          # [g1 | g2]
        # TODO(synk): nn.Dropout(p=0.1) layers are treated as identity (eval mode).
        o = jax.nn.relu(dot(g, wslab_ref[:nh, c_blk:c_blk + nh])
                        + bias_ref[:, b_o:b_o + nh])   # [o1 | o2]  (TB, 64)

        # --- encoder1 over the augmented outer product [o1,1] x [o2,1], exact:
        #   e1 = relu(o1@Wrow + o2@Wcol + (a*c)@Wcore + (be1 + Wcorner))
        #   a[b,i*d2+j] = o1[b,i],  c[b,i*d2+j] = o2[b,j]  via small 0/1 selectors.
        lin = dot(o, wslab_ref[:nh, c_rc:c_rc + H]) + bias_ref[:, b_e1:b_e1 + H]
        a = dot(o[:, :d1], wslab_ref[:d1, c_sel:])          # (TB, d1*d2)
        c = dot(o[:, d1:nh], wslab_ref[d1:nh, c_sel:])      # (TB, d1*d2)
        ac = (a * c).astype(bf16)                            # exact flattened outer product
        e1 = jax.nn.relu(lin + jnp.dot(ac, wcore_ref[...], preferred_element_type=f32))

        # --- encoder2 (skip=0); lane-dense padded output, sliced outside.
        out_ref[...] = jax.nn.relu(dot(e1, we2_ref[...]) + bias_ref[:, b_e2:b_e2 + n_pad])

    return kernel


def bilinear_fusion(vec1, vec2, kp):
    L = kp["layout"]
    B = vec1.shape[0]
    cat = jnp.concatenate([vec1, vec2], axis=1).astype(jnp.float32)   # fuses the 2 gate dots
    K = cat.shape[1]

    # Batch grid: TB=128 rows per step (could be 256 on v6e/v7x); weights get a
    # constant index_map so they are DMA'd once and stay VMEM-resident.
    TB = 128 if B >= 128 else _round_up(B, 8)
    Bp = _round_up(B, TB)
    if Bp != B:
        cat = jnp.pad(cat, ((0, Bp - B), (0, 0)))

    wslab, wcore, we2, biases = kp["wslab"], kp["wcore"], kp["we2"], kp["biases"]
    n_pad = L["n_pad"]

    flops = 2 * Bp * (K * L["n_in"] + L["nh"] * L["nh"] + L["nh"] * L["H"]
                      + 2 * L["d1"] * L["d1"] * L["d2"]
                      + L["d1"] * L["d2"] * L["H"] + L["H"] * n_pad)
    bytes_accessed = (cat.size * 4 + wslab.size * 2 + wcore.size * 2
                      + we2.size * 2 + biases.size * 4 + Bp * n_pad * 4)
    cost = pl.CostEstimate(flops=flops, transcendentals=Bp * L["nh"],
                           bytes_accessed=bytes_accessed)

    out = pl.pallas_call(
        _build_kernel(L),
        out_shape=jax.ShapeDtypeStruct((Bp, n_pad), jnp.float32),
        grid=(Bp // TB,),
        in_specs=[
            pl.BlockSpec((TB, K), lambda i: (i, 0)),            # activations, blocked
            pl.BlockSpec(wslab.shape, lambda i: (0, 0)),         # packed small weights + selectors
            pl.BlockSpec(wcore.shape, lambda i: (0, 0)),         # encoder1 core weight
            pl.BlockSpec(we2.shape, lambda i: (0, 0)),           # encoder2 weight (lane-padded)
            pl.BlockSpec(biases.shape, lambda i: (0, 0)),        # packed f32 biases
        ],
        out_specs=pl.BlockSpec((TB, n_pad), lambda i: (i, 0)),
        compiler_params=pltpu.CompilerParams(dimension_semantics=("parallel",)),
        cost_estimate=cost,
    )(cat, wslab, wcore, we2, biases)
    return out[:B, :L["mmhid"]]


def init_params(key, dim1_og=32, dim2_og=32, scale_dim1=1, scale_dim2=1, mmhid=32):
    """Raw PyTorch-equivalent weights (Linear stored as (in, out): y = x @ W + b)."""
    dim1 = dim1_og // scale_dim1
    dim2 = dim2_og // scale_dim2
    H = 256  # encoder1 output width hardcoded to 256 in the module
    ks = jax.random.split(key, 16)

    def w(k, shape, s=0.05):
        return jax.random.normal(k, shape, jnp.float32) * s

    return dict(
        wh1=w(ks[0], (dim1_og, dim1)), bh1=w(ks[1], (1, dim1)),
        wz1=w(ks[2], (dim1_og + dim2_og, dim1)), bz1=w(ks[3], (1, dim1)),
        wo1=w(ks[4], (dim1, dim1)), bo1=w(ks[5], (1, dim1)),
        wh2=w(ks[6], (dim2_og, dim2)), bh2=w(ks[7], (1, dim2)),
        wz2=w(ks[8], (dim1_og + dim2_og, dim2)), bz2=w(ks[9], (1, dim2)),
        wo2=w(ks[10], (dim2, dim2)), bo2=w(ks[11], (1, dim2)),
        we1=w(ks[12], ((dim1 + 1) * (dim2 + 1), H)), be1=w(ks[13], (1, H)),
        we2=w(ks[14], (H, mmhid)), be2=w(ks[15], (1, mmhid)),
    )


def pack_params(p):
    """Fuse / repack the raw weights into the kernel's packed-slab layout."""
    f32, bf16 = jnp.float32, jnp.bfloat16
    d1og, d1 = p["wh1"].shape
    d2og, d2 = p["wh2"].shape
    H = p["we1"].shape[1]
    mmhid = p["we2"].shape[1]

    # Fused input projection (acts on cat=[v1|v2]), columns [h1 | h2 | z1 | z2].
    w_in = jnp.concatenate([
        jnp.concatenate([p["wh1"], jnp.zeros((d1og, d2), f32),
                         p["wz1"][:d1og], p["wz2"][:d1og]], axis=1),
        jnp.concatenate([jnp.zeros((d2og, d1), f32), p["wh2"],
                         p["wz1"][d1og:], p["wz2"][d1og:]], axis=1),
    ], axis=0)
    b_s = jnp.concatenate([p["bh1"], p["bh2"], p["bz1"], p["bz2"]], axis=1)

    # Block-diagonal o1/o2 projection.
    w_blk = jnp.block([[p["wo1"], jnp.zeros((d1, d2), f32)],
                       [jnp.zeros((d2, d1), f32), p["wo2"]]])
    bo = jnp.concatenate([p["bo1"], p["bo2"]], axis=1)

    # Exact decomposition of encoder1 over the augmented outer product
    # (row index of we1 is i*(d2+1)+j, matching torch.bmm(...).flatten(1)).
    w3 = p["we1"].reshape(d1 + 1, d2 + 1, H)
    w_rc = jnp.concatenate([w3[:d1, d2, :], w3[d1, :d2, :]], axis=0)   # [Wrow ; Wcol]
    be1c = p["be1"] + w3[d1, d2, :][None, :]                           # be1 + Wcorner
    wcore = w3[:d1, :d2, :].reshape(d1 * d2, H)                        # row = i*d2+j

    # Small 0/1 selectors (half the size of the previous version):
    #   (o1 @ rep)[b, i*d2+j] = o1[b, i],   (o2 @ til)[b, i*d2+j] = o2[b, j].
    n = jnp.arange(d1 * d2)
    rep = (n[None, :] // d2 == jnp.arange(d1)[:, None]).astype(f32)    # (d1, d1*d2)
    til = (n[None, :] % d2 == jnp.arange(d2)[:, None]).astype(f32)     # (d2, d1*d2)

    # Lane-dense final projection (pad mmhid up to a multiple of 128).
    n_pad = max(128, _round_up(mmhid, 128))
    we2 = jnp.zeros((H, n_pad), f32).at[:, :mmhid].set(p["we2"])
    be2 = jnp.zeros((1, n_pad), f32).at[:, :mmhid].set(p["be2"])

    # --- one bf16 slab for all small weights + selectors (tile-aligned columns)
    nh, n_in, k_in = d1 + d2, w_in.shape[1], w_in.shape[0]
    c_in = 0
    c_blk = _round_up(n_in, 128)
    c_rc = _round_up(c_blk + nh, 128)
    c_sel = _round_up(c_rc + H, 128)
    ncols = c_sel + d1 * d2
    nrows = max(k_in, nh)
    slab = jnp.zeros((nrows, ncols), f32)
    slab = slab.at[:k_in, c_in:c_in + n_in].set(w_in)
    slab = slab.at[:nh, c_blk:c_blk + nh].set(w_blk)
    slab = slab.at[:nh, c_rc:c_rc + H].set(w_rc)
    slab = slab.at[:d1, c_sel:].set(rep)
    slab = slab.at[d1:nh, c_sel:].set(til)

    # --- one lane-padded f32 bias buffer [b_s | bo | be1+corner | be2]
    b_in = 0
    b_o = _round_up(n_in, 128)
    b_e1 = _round_up(b_o + nh, 128)
    b_e2 = _round_up(b_e1 + H, 128)
    biases = jnp.zeros((1, b_e2 + n_pad), f32)
    biases = biases.at[:, b_in:b_in + n_in].set(b_s)
    biases = biases.at[:, b_o:b_o + nh].set(bo)
    biases = biases.at[:, b_e1:b_e1 + H].set(be1c)
    biases = biases.at[:, b_e2:].set(be2)

    layout = dict(d1=d1, d2=d2, nh=nh, H=H, mmhid=mmhid, n_pad=n_pad,
                  k_in=k_in, n_in=n_in,
                  c_in=c_in, c_blk=c_blk, c_rc=c_rc, c_sel=c_sel,
                  b_in=b_in, b_o=b_o, b_e1=b_e1, b_e2=b_e2)
    return dict(wslab=slab.astype(bf16), wcore=wcore.astype(bf16),
                we2=we2.astype(bf16), biases=biases, layout=layout)


def reference(vec1, vec2, p):
    """Pure-JAX f32 reference of the PyTorch forward (eval mode)."""
    relu, sig = jax.nn.relu, jax.nn.sigmoid
    cat = jnp.concatenate([vec1, vec2], axis=1)
    h1 = relu(vec1 @ p["wh1"] + p["bh1"])
    z1 = cat @ p["wz1"] + p["bz1"]
    o1 = relu((sig(z1) * h1) @ p["wo1"] + p["bo1"])
    h2 = relu(vec2 @ p["wh2"] + p["bh2"])
    z2 = cat @ p["wz2"] + p["bz2"]
    o2 = relu((sig(z2) * h2) @ p["wo2"] + p["bo2"])
    B = vec1.shape[0]
    o1e = jnp.concatenate([o1, jnp.ones((B, 1), jnp.float32)], axis=1)
    o2e = jnp.concatenate([o2, jnp.ones((B, 1), jnp.float32)], axis=1)
    o12 = (o1e[:, :, None] * o2e[:, None, :]).reshape(B, -1)
    e1 = relu(o12 @ p["we1"] + p["be1"])
    return relu(e1 @ p["we2"] + p["be2"])


if __name__ == "__main__":
    B, D1, D2, MMHID = 8, 32, 32, 32
    key = jax.random.PRNGKey(0)
    k1, k2, kw = jax.random.split(key, 3)
    vec1 = jax.random.normal(k1, (B, D1), jnp.float32)
    vec2 = jax.random.normal(k2, (B, D2), jnp.float32)
    raw = init_params(kw, dim1_og=D1, dim2_og=D2, mmhid=MMHID)
    kp = pack_params(raw)

    out = jax.block_until_ready(bilinear_fusion(vec1, vec2, kp))

    ref = reference(vec1, vec2, raw)
    assert out.shape == (B, MMHID), out.shape
    err = float(jnp.max(jnp.abs(out - ref)))
    # bf16 matmul operands (f32 accumulation) vs. f32 reference => bf16-level tolerance.
    assert jnp.allclose(out, ref, rtol=5e-2, atol=1e-2), f"max abs err {err}"
    print("KERNEL_OK")
</pallas_src>

<mosaic_0001>
module attributes {stable_mosaic.version = 11 : i64} {
  func.func @kernel(%arg0: i32, %arg1: memref<8x64xf32, #tpu.memory_space<vmem>>, %arg2: memref<64x1536xbf16, #tpu.memory_space<vmem>>, %arg3: memref<1024x256xbf16, #tpu.memory_space<vmem>>, %arg4: memref<256x128xbf16, #tpu.memory_space<vmem>>, %arg5: memref<1x640xf32, #tpu.memory_space<vmem>>, %arg6: memref<8x128xf32, #tpu.memory_space<vmem>>) attributes {dimension_semantics = [#tpu.dimension_semantics<parallel>], iteration_bounds = array<i64: 1>, scalar_prefetch = 0 : i64, scratch_operands = 0 : i64, tpu.core_type = #tpu.core_type<tc>, window_params = [{transform_indices = @transform_0, window_bounds = array<i64: 8, 64>}, {pipeline_mode = #tpu.pipeline_mode<synchronous>, transform_indices = @transform_1, window_bounds = array<i64: 64, 1536>}, {pipeline_mode = #tpu.pipeline_mode<synchronous>, transform_indices = @transform_2, window_bounds = array<i64: 1024, 256>}, {pipeline_mode = #tpu.pipeline_mode<synchronous>, transform_indices = @transform_3, window_bounds = array<i64: 256, 128>}, {pipeline_mode = #tpu.pipeline_mode<synchronous>, transform_indices = @transform_4, window_bounds = array<i64: 1, 640>}, {transform_indices = @transform_5, window_bounds = array<i64: 8, 128>}]} {
    %c0 = arith.constant 0 : index
    %c0_0 = arith.constant 0 : index
    %0 = vector.load %arg1[%c0, %c0_0] : memref<8x64xf32, #tpu.memory_space<vmem>>, vector<8x64xf32>
    %c0_1 = arith.constant 0 : index
    %c0_2 = arith.constant 0 : index
    %1 = vector.load %arg2[%c0_1, %c0_2] : memref<64x1536xbf16, #tpu.memory_space<vmem>>, vector<64x128xbf16>
    %2 = arith.truncf %0 : vector<8x64xf32> to vector<8x64xbf16>
    %cst = arith.constant dense<0.000000e+00> : vector<8x128xf32>
    %3 = tpu.matmul %2, %1, %cst {dimension_numbers = #tpu.dot_dimension_numbers<[1], [0], [0], [1], [0, 0, 1, 1], [], []>} : vector<8x64xbf16>, vector<64x128xbf16>, vector<8x128xf32> -> vector<8x128xf32>
    %c0_3 = arith.constant 0 : index
    %c0_4 = arith.constant 0 : index
    %4 = vector.load %arg5[%c0_3, %c0_4] : memref<1x640xf32, #tpu.memory_space<vmem>>, vector<1x128xf32>
    %5 = vector.broadcast %4 : vector<1x128xf32> to vector<8x128xf32>
    %6 = arith.addf %3, %5 : vector<8x128xf32>
    %7 = vector.extract_strided_slice %6 {offsets = [0, 0], sizes = [8, 64], strides = [1, 1]} : vector<8x128xf32> to vector<8x64xf32>
    %cst_5 = arith.constant 0.000000e+00 : f32
    %8 = vector.broadcast %cst_5 : f32 to vector<8x64xf32>
    %9 = arith.maximumf %7, %8 : vector<8x64xf32>
    %10 = vector.extract_strided_slice %6 {offsets = [0, 64], sizes = [8, 64], strides = [1, 1]} : vector<8x128xf32> to vector<8x64xf32>
    %11 = arith.negf %10 : vector<8x64xf32>
    %12 = math.exp %11 : vector<8x64xf32>
    %cst_6 = arith.constant 1.000000e+00 : f32
    %13 = vector.broadcast %cst_6 : f32 to vector<8x64xf32>
    %14 = arith.addf %13, %12 : vector<8x64xf32>
    %15 = arith.divf %13, %14 : vector<8x64xf32>
    %16 = arith.mulf %15, %9 : vector<8x64xf32>
    %c0_7 = arith.constant 0 : index
    %c128 = arith.constant 128 : index
    %17 = vector.load %arg2[%c0_7, %c128] : memref<64x1536xbf16, #tpu.memory_space<vmem>>, vector<64x64xbf16>
    %18 = arith.truncf %16 : vector<8x64xf32> to vector<8x64xbf16>
    %cst_8 = arith.constant dense<0.000000e+00> : vector<8x64xf32>
    %19 = tpu.matmul %18, %17, %cst_8 {dimension_numbers = #tpu.dot_dimension_numbers<[1], [0], [0], [1], [0, 0, 1, 1], [], []>} : vector<8x64xbf16>, vector<64x64xbf16>, vector<8x64xf32> -> vector<8x64xf32>
    %c0_9 = arith.constant 0 : index
    %c128_10 = arith.constant 128 : index
    %20 = vector.load %arg5[%c0_9, %c128_10] : memref<1x640xf32, #tpu.memory_space<vmem>>, vector<1x64xf32>
    %21 = vector.broadcast %20 : vector<1x64xf32> to vector<8x64xf32>
    %22 = arith.addf %19, %21 : vector<8x64xf32>
    %cst_11 = arith.constant 0.000000e+00 : f32
    %23 = vector.broadcast %cst_11 : f32 to vector<8x64xf32>
    %24 = arith.maximumf %22, %23 : vector<8x64xf32>
    %c0_12 = arith.constant 0 : index
    %c256 = arith.constant 256 : index
    %25 = vector.load %arg2[%c0_12, %c256] : memref<64x1536xbf16, #tpu.memory_space<vmem>>, vector<64x256xbf16>
    %26 = arith.truncf %24 : vector<8x64xf32> to vector<8x64xbf16>
    %cst_13 = arith.constant dense<0.000000e+00> : vector<8x256xf32>
    %27 = tpu.matmul %26, %25, %cst_13 {dimension_numbers = #tpu.dot_dimension_numbers<[1], [0], [0], [1], [0, 0, 1, 1], [], []>} : vector<8x64xbf16>, vector<64x256xbf16>, vector<8x256xf32> -> vector<8x256xf32>
    %c0_14 = arith.constant 0 : index
    %c256_15 = arith.constant 256 : index
    %28 = vector.load %arg5[%c0_14, %c256_15] : memref<1x640xf32, #tpu.memory_space<vmem>>, vector<1x256xf32>
    %29 = vector.broadcast %28 : vector<1x256xf32> to vector<8x256xf32>
    %30 = arith.addf %27, %29 : vector<8x256xf32>
    %31 = vector.extract_strided_slice %24 {offsets = [0, 0], sizes = [8, 32], strides = [1, 1]} : vector<8x64xf32> to vector<8x32xf32>
    %c0_16 = arith.constant 0 : index
    %c512 = arith.constant 512 : index
    %32 = vector.load %arg2[%c0_16, %c512] : memref<64x1536xbf16, #tpu.memory_space<vmem>>, vector<32x1024xbf16>
    %33 = arith.truncf %31 : vector<8x32xf32> to vector<8x32xbf16>
    %cst_17 = arith.constant dense<0.000000e+00> : vector<8x1024xf32>
    %34 = tpu.matmul %33, %32, %cst_17 {dimension_numbers = #tpu.dot_dimension_numbers<[1], [0], [0], [1], [0, 0, 1, 1], [], []>} : vector<8x32xbf16>, vector<32x1024xbf16>, vector<8x1024xf32> -> vector<8x1024xf32>
    %35 = vector.extract_strided_slice %24 {offsets = [0, 32], sizes = [8, 32], strides = [1, 1]} : vector<8x64xf32> to vector<8x32xf32>
    %c32 = arith.constant 32 : index
    %c512_18 = arith.constant 512 : index
    %36 = vector.load %arg2[%c32, %c512_18] : memref<64x1536xbf16, #tpu.memory_space<vmem>>, vector<32x1024xbf16>
    %37 = arith.truncf %35 : vector<8x32xf32> to vector<8x32xbf16>
    %cst_19 = arith.constant dense<0.000000e+00> : vector<8x1024xf32>
    %38 = tpu.matmul %37, %36, %cst_19 {dimension_numbers = #tpu.dot_dimension_numbers<[1], [0], [0], [1], [0, 0, 1, 1], [], []>} : vector<8x32xbf16>, vector<32x1024xbf16>, vector<8x1024xf32> -> vector<8x1024xf32>
    %39 = arith.mulf %34, %38 : vector<8x1024xf32>
    %40 = arith.truncf %39 : vector<8x1024xf32> to vector<8x1024xbf16>
    %c0_20 = arith.constant 0 : index
    %c0_21 = arith.constant 0 : index
    %41 = vector.load %arg3[%c0_20, %c0_21] : memref<1024x256xbf16, #tpu.memory_space<vmem>>, vector<1024x256xbf16>
    %cst_22 = arith.constant dense<0.000000e+00> : vector<8x256xf32>
    %42 = tpu.matmul %40, %41, %cst_22 {dimension_numbers = #tpu.dot_dimension_numbers<[1], [0], [0], [1], [0, 0, 1, 1], [], []>} : vector<8x1024xbf16>, vector<1024x256xbf16>, vector<8x256xf32> -> vector<8x256xf32>
    %43 = arith.addf %30, %42 : vector<8x256xf32>
    %cst_23 = arith.constant 0.000000e+00 : f32
    %44 = vector.broadcast %cst_23 : f32 to vector<8x256xf32>
    %45 = arith.maximumf %43, %44 : vector<8x256xf32>
    %c0_24 = arith.constant 0 : index
    %c0_25 = arith.constant 0 : index
    %46 = vector.load %arg4[%c0_24, %c0_25] : memref<256x128xbf16, #tpu.memory_space<vmem>>, vector<256x128xbf16>
    %47 = arith.truncf %45 : vector<8x256xf32> to vector<8x256xbf16>
    %cst_26 = arith.constant dense<0.000000e+00> : vector<8x128xf32>
    %48 = tpu.matmul %47, %46, %cst_26 {dimension_numbers = #tpu.dot_dimension_numbers<[1], [0], [0], [1], [0, 0, 1, 1], [], []>} : vector<8x256xbf16>, vector<256x128xbf16>, vector<8x128xf32> -> vector<8x128xf32>
    %c0_27 = arith.constant 0 : index
    %c512_28 = arith.constant 512 : index
    %49 = vector.load %arg5[%c0_27, %c512_28] : memref<1x640xf32, #tpu.memory_space<vmem>>, vector<1x128xf32>
    %50 = vector.broadcast %49 : vector<1x128xf32> to vector<8x128xf32>
    %51 = arith.addf %48, %50 : vector<8x128xf32>
    %cst_29 = arith.constant 0.000000e+00 : f32
    %52 = vector.broadcast %cst_29 : f32 to vector<8x128xf32>
    %53 = arith.maximumf %51, %52 : vector<8x128xf32>
    %c0_30 = arith.constant 0 : index
    %c0_31 = arith.constant 0 : index
    %54 = vector.load %arg6[%c0_30, %c0_31] : memref<8x128xf32, #tpu.memory_space<vmem>>, vector<8x128xf32>
    tpu.vector_store %arg6[%c0_30, %c0_31], %53 {strides = array<i32>} : memref<8x128xf32, #tpu.memory_space<vmem>>, vector<8x128xf32>,
    return
  }
  func.func @transform_0(%arg0: i32) -> (i32, i32) {
    %c0_i32 = arith.constant 0 : i32
    %c0_i32_0 = arith.constant 0 : i32
    return %arg0, %c0_i32 : i32, i32
  }
  func.func @transform_1(%arg0: i32) -> (i32, i32) {
    %c0_i32 = arith.constant 0 : i32
    %c0_i32_0 = arith.constant 0 : i32
    %c0_i32_1 = arith.constant 0 : i32
    return %c0_i32, %c0_i32_0 : i32, i32
  }
  func.func @transform_2(%arg0: i32) -> (i32, i32) {
    %c0_i32 = arith.constant 0 : i32
    %c0_i32_0 = arith.constant 0 : i32
    %c0_i32_1 = arith.constant 0 : i32
    return %c0_i32, %c0_i32_0 : i32, i32
  }
  func.func @transform_3(%arg0: i32) -> (i32, i32) {
    %c0_i32 = arith.constant 0 : i32
    %c0_i32_0 = arith.constant 0 : i32
    %c0_i32_1 = arith.constant 0 : i32
    return %c0_i32, %c0_i32_0 : i32, i32
  }
  func.func @transform_4(%arg0: i32) -> (i32, i32) {
    %c0_i32 = arith.constant 0 : i32
    %c0_i32_0 = arith.constant 0 : i32
    %c0_i32_1 = arith.constant 0 : i32
    return %c0_i32, %c0_i32_0 : i32, i32
  }
  func.func @transform_5(%arg0: i32) -> (i32, i32) {
    %c0_i32 = arith.constant 0 : i32
    %c0_i32_0 = arith.constant 0 : i32
    return %arg0, %c0_i32 : i32, i32
  }
}

</mosaic_0001>

<bundles_post_ra>
// kernel: tpu_custom_call.1
= control target key start
LH: loop header
LB: loop body
LE: loop exit
PB: predicated region body
PF: predicated region fallthrough
CT: control target
= control target key end

     0   :  { %10 = vsyncpa [#allocation3], 0  ;;  %s3203_s0 = inlined_call_operand.hbm [shape: f32[8,64], index: 0, kind: input, shape index: {}]   ;;  %s3204_s1 = inlined_call_operand.hbm [shape: bf16[64,1536], index: 1, kind: input, shape index: {}]   ;;  %s3205_s2 = inlined_call_operand.hbm [shape: bf16[1024,256], index: 2, kind: input, shape index: {}]   ;;  %s3206_s3 = inlined_call_operand.hbm [shape: bf16[256,128], index: 3, kind: input, shape index: {}]   ;;  %s3207_s4 = inlined_call_operand.hbm [shape: f32[1,640], index: 4, kind: input, shape index: {}]   ;;  %s3208_s5 = inlined_call_operand.hbm [shape: f32[8,128], index: 5, kind: output, shape index: {}]  }
   0x1   :  { %11 = vsyncpa [#allocation6], 0 }
   0x2   :  { %12 = vsyncpa [#allocation9], 0  ;;  %s29_s20 = sshll.u32 %s3204_s1, 4  ;;  %s30_s20 = int_to_ptr.hbm [resolvable:$true] %s29_s20 }
   0x3   :  { %13 = vsyncpa [#allocation4], 0  ;;  %s3056_s21 = smov [#allocation5]   ;;  %s55_s25 = sshll.u32 %s3206_s3, 4  ;;  %s56_s25 = int_to_ptr.hbm [resolvable:$true] %s55_s25 }
   0x4   :  { %s31_s22 = sshll.u32 %s3056_s21, 4  ;;  %s3057_s26 = smov 768   ;;  %s32_s22 = int_to_ptr.vmem [resolvable:$true] %s31_s22 }
   0x5   :  { %s3058_s27 = smov 48   ;;  %s3059_s28 = smov [#allocation8]  }
   0x6   :  { %37 = dma.hbm_to_vmem [thread:$0]  %s30_s20, 6144, %s32_s22, [#allocation6], %s3057_s26, %s3057_s26, %s3058_s27  }
   0x7   :  { %s57_s29 = sshll.u32 %s3059_s28, 4  ;;  %s3060_s30 = smov 64   ;;  %s58_s29 = int_to_ptr.vmem [resolvable:$true] %s57_s29 }
   0x8   :  { %s3061_s6 = smov 4   ;;  %s19_s8 = sshll.u32 %s3203_s0, 4  ;;  %s20_s8 = int_to_ptr.hbm [resolvable:$true] %s19_s8 }
   0x9   :  { %63 = dma.hbm_to_vmem [thread:$0]  %s56_s25, 2048, %s58_s29, [#allocation9], %s3060_s30, %s3060_s30, %s3061_s6  }
   0xa   :  { %s3062_s9 = smov [#allocation2]   ;;  %s42_s12 = sshll.u32 %s3205_s2, 4  ;;  %s43_s12 = int_to_ptr.hbm [resolvable:$true] %s42_s12 }
   0xb   :  { %s21_s10 = sshll.u32 %s3062_s9, 4  ;;  %s3063_s13 = smov [#allocation7]   ;;  %s22_s10 = int_to_ptr.vmem [resolvable:$true] %s21_s10 }
   0xc   :  { %24 = dma.hbm_to_vmem [thread:$0]  %s20_s8, 128, %s22_s10, [#allocation3]  }
   0xd   :  { %s44_s14 = sshll.u32 %s3063_s13, 4  ;;  %s3064_s15 = smov 128   ;;  %s45_s14 = int_to_ptr.vmem [resolvable:$true] %s44_s14 }
   0xe   :  { %s3065_s16 = smov 8   ;;  %s69_s0 = sshll.u32 %s3207_s4, 4  ;;  %s70_s0 = int_to_ptr.hbm [resolvable:$true] %s69_s0 }
   0xf   :  { %50 = dma.hbm_to_vmem [thread:$0]  %s43_s12, 16384, %s45_s14, [#allocation6], %s3064_s15, %s3064_s15, %s3065_s16  }
  0x10   :  { %s3066_s19 = smov [#allocation10]  }
  0x11   :  { %s71_s20 = sshll.u32 %s3066_s19, 4  ;;  %s72_s20 = int_to_ptr.vmem [resolvable:$true] %s71_s20 }
  0x12   :  { %74 = dma.hbm_to_vmem [thread:$0]  %s70_s0, 80, %s72_s20, [#allocation9]  }
  0x13   :  { %3048 = dma.done.wait [#allocation3], 128  }
  0x14   :  { %3049 = vsyncadd [#allocation3], 4294967168 }
  0x15   :  { %3050 = dma.done.wait [#allocation6], 22528  }
  0x16   :  { %3051 = vsyncadd [#allocation6], 4294944768 }
  0x17   :  { %3052 = dma.done.wait [#allocation9], 2128  }
  0x18   :  { %3053 = vsyncadd [#allocation9], 4294965168  ;;  %v1917_v0 = vld [vmem:[#allocation5 + $0x120] sm:$0xf]  ;;  %v2695_v1 = vld [vmem:[#allocation5 + $0x14c] sm:$0xf0] }
  0x19   :  { %v1913_v2 = vld [vmem:[#allocation5 + $0xc0] sm:$0xf]  ;;  %v1918_v3 = vor.u32 %v2695_v1, %v1917_v0  ;;  %v2694_v4 = vld [vmem:[#allocation5 + $0xec] sm:$0xf0]  ;;  %v96_v12 = vld [vmem:[#allocation2] sm:$0xff]  ;;  %vm134_vm0 = vcmask 523264  }
  0x1a   :  { %v1914_v5 = vor.u32 %v2694_v4, %v1913_v2  ;;  %v1909_v6 = vld [vmem:[#allocation5 + $0x60] sm:$0xf]  ;;  %v2693_v7 = vld [vmem:[#allocation5 + $0x8c] sm:$0xf0]  ;;  %v105_v13 = vpack.c.bf16 %v96_v12, %v96_v12  ;;  %v1935_v22 = vld [vmem:[#allocation5 + $0x124] sm:$0xf] }
  0x1b   :  { %142 = vmatpush.bf16.msra.mxu2 %v1918_v3  ;;  %v1910_v8 = vor.u32 %v2693_v7, %v1909_v6  ;;  %v1905_v9 = vld [vmem:[#allocation5] sm:$0xf]  ;;  %v2692_v10 = vld [vmem:[#allocation5 + $0x2c] sm:$0xf0]  ;;  %v2699_v23 = vld [vmem:[#allocation5 + $0x150] sm:$0xf0] }
  0x1c   :  { %v1906_v11 = vor.u32 %v2692_v10, %v1905_v9  ;;  %v2897_v14 = vld [vmem:[#allocation10] ss:$0 sm:$0xff]  ;;  %v1931_v24 = vld [vmem:[#allocation5 + $0xc4] sm:$0xf]  ;;  %v1936_v25 = vor.u32 %v2699_v23, %v1935_v22  ;;  %v2698_v26 = vld [vmem:[#allocation5 + $0xf0] sm:$0xf0] }
  0x1d   :  { %v1932_v27 = vor.u32 %v2698_v26, %v1931_v24  ;;  %v1927_v28 = vld [vmem:[#allocation5 + $0x64] sm:$0xf]  ;;  %v2697_v29 = vld [vmem:[#allocation5 + $0x90] sm:$0xf0]  ;;  %v1964_v47 = vld [vmem:[#allocation5 + $0x128] sm:$0xf] }
  0x1e   :  { %223 = vmatpush.bf16.msra.mxu3 %v1936_v25  ;;  %v1928_v31 = vor.u32 %v2697_v29, %v1927_v28  ;;  %v1923_v33 = vld [vmem:[#allocation5 + $0x4] sm:$0xf]  ;;  %v2696_v34 = vld [vmem:[#allocation5 + $0x30] sm:$0xf0]  ;;  %v2707_v48 = vld [vmem:[#allocation5 + $0x154] sm:$0xf0] }
  0x1f   :  { %143 = vmatpush.bf16.msra.mxu2 %v1914_v5  ;;  %v1924_v35 = vor.u32 %v2696_v34, %v1923_v33  ;;  %v2706_v49 = vld [vmem:[#allocation5 + $0x12c] sm:$0xf]  ;;  %v1965_v50 = vor.u32 %v2707_v48, %v1964_v47  ;;  %v1966_v51 = vld [vmem:[#allocation5 + $0x158] sm:$0xf0]  ;;  %v1956_v52 = vld [vmem:[#allocation5 + $0xc8] sm:$0xf] }
  0x20   :  { %v2705_v53 = vld [vmem:[#allocation5 + $0xf4] sm:$0xf0]  ;;  %v1969_v54 = vor.u32 %v2706_v49, %v1966_v51  ;;  %v2704_v55 = vld [vmem:[#allocation5 + $0xcc] sm:$0xf]  ;;  %v1958_v56 = vld [vmem:[#allocation5 + $0xf8] sm:$0xf0] }
  0x21   :  { %v1957_v57 = vor.u32 %v2705_v53, %v1956_v52  ;;  %v1961_v58 = vor.u32 %v2704_v55, %v1958_v56  ;;  %v1948_v60 = vld [vmem:[#allocation5 + $0x68] sm:$0xf]  ;;  %v2703_v61 = vld [vmem:[#allocation5 + $0x94] sm:$0xf0]  ;;  %v2702_v62 = vld [vmem:[#allocation5 + $0x6c] sm:$0xf] }
  0x22   :  { %224 = vmatpush.bf16.msra.mxu3 %v1932_v27  ;;  %v1949_v63 = vor.u32 %v2703_v61, %v1948_v60  ;;  %v1950_v0 = vld [vmem:[#allocation5 + $0x98] sm:$0xf0]  ;;  %v2006_v1 = vld [vmem:[#allocation5 + $0x70] sm:$0xf]  ;;  %v2720_v2 = vld [vmem:[#allocation5 + $0x9c] sm:$0xf0] }
  0x23   :  { %144 = vmatpush.bf16.msra.mxu2 %v1910_v8  ;;  %v1953_v3 = vor.u32 %v2702_v62, %v1950_v0  ;;  %v2007_v4 = vor.u32 %v2720_v2, %v2006_v1  ;;  %v2716_v5 = vld [vmem:[#allocation5 + $0x74] sm:$0xf]  ;;  %v2008_v6 = vld [vmem:[#allocation5 + $0xa0] sm:$0xf0]  ;;  %v1940_v8 = vld [vmem:[#allocation5 + $0x8] sm:$0xf] }
  0x24   :  { %v2011_v7 = vor.u32 %v2716_v5, %v2008_v6  ;;  %v2701_v9 = vld [vmem:[#allocation5 + $0x34] sm:$0xf0]  ;;  %v2700_v10 = vld [vmem:[#allocation5 + $0xc] sm:$0xf]  ;;  %v1942_v12 = vld [vmem:[#allocation5 + $0x38] sm:$0xf0] }
  0x25   :  { %422 = vmatpush.bf16.msra.mxu0 %v2007_v4  ;;  %v2717_v22 = vld [vmem:[#allocation5 + $0x7c] sm:$0xf]  ;;  %v2016_v24 = vld [vmem:[#allocation5 + $0xa8] sm:$0xf0]  ;;  %v2022_v25 = vld [vmem:[#allocation5 + $0x80] sm:$0xf] }
  0x26   :  { %225 = vmatpush.bf16.msra.mxu3 %v1928_v31  ;;  %435 = vmatpush.bf16.msra.mxu1 %v2011_v7  ;;  %v2722_v26 = vld [vmem:[#allocation5 + $0xac] sm:$0xf0]  ;;  %v2019_v27 = vor.u32 %v2717_v22, %v2016_v24  ;;  %v2718_v29 = vld [vmem:[#allocation5 + $0x84] sm:$0xf]  ;;  %v1982_v31 = vld [vmem:[#allocation5 + $0x18] sm:$0xf] }
  0x27   :  { %145 = vmatpush.bf16.msra.mxu2 %v1906_v11  ;;  %v1941_v11 = vor.u32 %v2701_v9, %v1940_v8  ;;  %v2023_v28 = vor.u32 %v2722_v26, %v2022_v25  ;;  %v2713_v33 = vld [vmem:[#allocation5 + $0x44] sm:$0xf0]  ;;  %v2709_v34 = vld [vmem:[#allocation5 + $0x1c] sm:$0xf]  ;;  %v2723_v48 = vld [vmem:[#allocation5 + $0xb4] sm:$0xf0] }
  0x28   :  { %v2030_v47 = vld [vmem:[#allocation5 + $0x88] sm:$0xf]  ;;  %v2032_v51 = vld [vmem:[#allocation5 + $0xb8] sm:$0xf0]  ;;  %vm413_vm5 = vcmask 261120   ;;  %s3067_s2 = smov 96  }
  0x29   :  { %v2031_v53 = vor.u32 %v2723_v48, %v2030_v47  ;;  %v1998_v55 = vld [vmem:[#allocation5 + $0x28] sm:$0xf]  ;;  %v2715_v56 = vld [vmem:[#allocation5 + $0x54] sm:$0xf0]  ;;  %v2078_v60 = vld [vmem:[#allocation5 + $0x130] sm:$0xf] }
  0x2a   :  { %1919 = vmatmul.msk.bf16.vlgmr.msra.gmra.mxu2 %vm134_vm0, %v105_v13  ;;  %226 = vmatpush.bf16.msra.mxu3 %v1924_v35  ;;  %v1974_v13 = vld [vmem:[#allocation5 + $0x10] sm:$0xf]  ;;  %v1984_v35 = vld [vmem:[#allocation5 + $0x48] sm:$0xf0]  ;;  %v2736_v61 = vld [vmem:[#allocation5 + $0x15c] sm:$0xf0] }
  0x2b   :  { %295 = vmatpush.bf16.msrb.mxu2 %v1965_v50  ;;  %v2719_v50 = vld [vmem:[#allocation5 + $0x8c] sm:$0xf]  ;;  %v2732_v62 = vld [vmem:[#allocation5 + $0x134] sm:$0xf]  ;;  %v2079_v0 = vor.u32 %v2736_v61, %v2078_v60  ;;  %v2080_v1 = vld [vmem:[#allocation5 + $0x160] sm:$0xf0] }
  0x2c   :  { %v2046_v4 = vld [vmem:[#allocation5 + $0xd0] sm:$0xf]  ;;  %v2728_v5 = vld [vmem:[#allocation5 + $0xfc] sm:$0xf0]  ;;  %v2724_v6 = vld [vmem:[#allocation5 + $0xd4] sm:$0xf] }
  0x2d   :  { %v2048_v7 = vld [vmem:[#allocation5 + $0x100] sm:$0xf0]  ;;  %v2047_v8 = vor.u32 %v2728_v5, %v2046_v4  ;;  %v2094_v22 = vld [vmem:[#allocation5 + $0x140] sm:$0xf]  ;;  %v2096_v26 = vld [vmem:[#allocation5 + $0x170] sm:$0xf0] }
  0x2e   :  { %308 = vmatpush.bf16.msrb.mxu3 %v1969_v54  ;;  %v2035_v54 = vor.u32 %v2719_v50, %v2032_v51  ;;  %v2051_v9 = vor.u32 %v2724_v6, %v2048_v7  ;;  %v2734_v24 = vld [vmem:[#allocation5 + $0x144] sm:$0xf]  ;;  %v2166_v60 = vld [vmem:[#allocation7 + $0x60] sm:$0xf]  ;;  %v2753_v61 = vld [vmem:[#allocation7 + $0x64] sm:$0xf0] }
  0x2f   :  { %296 = vmatpush.bf16.msrb.mxu2 %v1957_v57  ;;  %v2711_v57 = vld [vmem:[#allocation5 + $0x2c] sm:$0xf]  ;;  %v2167_v4 = vor.u32 %v2753_v61, %v2166_v60  ;;  %v2787_v5 = vld [vmem:[#allocation7 + $0x174] sm:$0xf0]  ;;  %v2366_v6 = vld [vmem:[#allocation7 + $0x1f0] sm:$0xf] }
  0x30   :  { %v2803_v7 = vld [vmem:[#allocation7 + $0x1f4] sm:$0xf0]  ;;  %v2134_v61 = vld [vmem:[#allocation7 + $0x20] sm:$0xf]  ;;  %s3068_s4 = smov [#allocation11]   ;;  %s1891_s24 = sshll.u32 %s3208_s5, 4  ;;  %s1892_s24 = int_to_ptr.hbm [resolvable:$true] %s1891_s24 }
  0x31   :  { %s1889_s21 = sshll.u32 %s3068_s4, 4  ;;  %s1890_s21 = int_to_ptr.vmem [resolvable:$true] %s1889_s21 }
  0x32   :  { %309 = vmatpush.bf16.msrb.mxu3 %v1961_v58  ;;  %v2000_v58 = vld [vmem:[#allocation5 + $0x58] sm:$0xf0] }
  0x33   :  { %297 = vmatpush.bf16.msrb.mxu2 %v1949_v63  ;;  %v1999_v63 = vor.u32 %v2715_v56, %v1998_v55  ;;  %v2003_v2 = vor.u32 %v2711_v57, %v2000_v58  ;;  %v2174_v55 = vld [vmem:[#allocation7 + $0x70] sm:$0xf]  ;;  %v2755_v56 = vld [vmem:[#allocation7 + $0x74] sm:$0xf0] }
  0x34   :  { %v2238_v57 = vld [vmem:[#allocation7 + $0xf0] sm:$0xf]  ;;  %v2175_v58 = vor.u32 %v2755_v56, %v2174_v55  ;;  %v2779_v56 = vld [vmem:[#allocation7 + $0x134] sm:$0xf0] }
  0x36   :  { %310 = vmatpush.bf16.msrb.mxu3 %v1953_v3  ;;  %v2083_v3 = vor.u32 %v2732_v62, %v2080_v1  ;;  %v2769_v1 = vld [vmem:[#allocation7 + $0xe4] sm:$0xf0] }
  0x37   :  { %298 = vmatpush.bf16.msrb.mxu2 %v1941_v11  ;;  %v2737_v11 = vld [vmem:[#allocation5 + $0x164] sm:$0xf0] }
  0xad   :  { %v147_v15 = vpop.f32.mrf.mxu2 }
  0xae   :  { %v148_v16 = vadd.f32 %v2897_v14, %v147_v15  ;;  %v2712_v14 = vld [vmem:[#allocation5 + $0x3c] sm:$0xf0]  ;;  %v1945_v15 = vor.u32 %v2700_v10, %v1942_v12  ;;  %v2086_v10 = vld [vmem:[#allocation5 + $0x138] sm:$0xf]  ;;  %v2733_v12 = vld [vmem:[#allocation5 + $0x13c] sm:$0xf] }
  0xb0   :  { %v151_v17 = vmax.f32 %v148_v16, 0.0  ;;  %v1920_v19 = vmul.f32 -1.442695, %v148_v16  ;;  %v1975_v16 = vor.u32 %v2712_v14, %v1974_v13  ;;  %311 = vmatpush.bf16.msrb.mxu3 %v1945_v15  ;;  %v2088_v13 = vld [vmem:[#allocation5 + $0x168] sm:$0xf0]  ;;  %v2087_v14 = vor.u32 %v2737_v11, %v2086_v10 }
  0xb1   :  { %v2091_v15 = vor.u32 %v2733_v12, %v2088_v13  ;;  %v2367_v10 = vor.u32 %v2803_v7, %v2366_v6  ;;  %v2158_v11 = vld [vmem:[#allocation7 + $0x50] sm:$0xf]  ;;  %v2751_v12 = vld [vmem:[#allocation7 + $0x54] sm:$0xf0]  ;;  %v2777_v7 = vld [vmem:[#allocation7 + $0x124] sm:$0xf0] }
  0xb2   :  { %172 = vrot.lane.b32.xlu0 %v151_v17, %s3060_s30  ;;  %2900 = vpow2.f32 %v1920_v19  ;;  %v2708_v17 = vld [vmem:[#allocation5 + $0x14] sm:$0xf]  ;;  %423 = vmatpush.bf16.msra.mxu0 %v1975_v16  ;;  %v2054_v16 = vld [vmem:[#allocation5 + $0xd8] sm:$0xf]  ;;  %v2222_v13 = vld [vmem:[#allocation7 + $0xd0] sm:$0xf] }
  0xb5   :  { %v149_v18 = vpop.f32.mrf.mxu2 }
  0xb6   :  { %v1976_v18 = vld [vmem:[#allocation5 + $0x40] sm:$0xf0]  ;;  %474 = vmatpush.bf16.msrb.mxu0 %v2023_v28  ;;  %v2739_v28 = vld [vmem:[#allocation5 + $0x174] sm:$0xf0] }
  0xb7   :  { %v1979_v19 = vor.u32 %v2708_v17, %v1976_v18  ;;  %v2729_v17 = vld [vmem:[#allocation5 + $0x104] sm:$0xf0]  ;;  %v2725_v18 = vld [vmem:[#allocation5 + $0xdc] sm:$0xf] }
  0xb8   :  { %v2901_v20 = vpop.eup %2900 }
  0xb9   :  { %v155_v21 = vadd.f32 1.0, %v2901_v20  ;;  %436 = vmatpush.bf16.msra.mxu1 %v1979_v19  ;;  %v2014_v20 = vld [vmem:[#allocation5 + $0x78] sm:$0xf]  ;;  %v2056_v19 = vld [vmem:[#allocation5 + $0x108] sm:$0xf0] }
  0xbb   :  { %2902 = vrcp.f32 %v155_v21  ;;  %v167_v39 = vand.u32 2147483648, %v155_v21  ;;  %vm161_vm2 = vweird.f32 %v155_v21  ;;  %v165_v40 = vand.u32 2147483647, %v155_v21 }
  0xbd   :  { %v168_v42 = vor.u32 1.1754944e-38, %v167_v39  ;;  %vm166_vm4 = vcmp.eq.f32.partialorder %v165_v40, 8.507059e+37  ;;  %v2714_v39 = vld [vmem:[#allocation5 + $0x4c] sm:$0xf0]  ;;  %v2710_v40 = vld [vmem:[#allocation5 + $0x24] sm:$0xf] }
  0xc1   :  { %v2903_v30 = vpop.eup %2902 }
  0xc2   :  { %v157_v32 = vmul.f32 %v2903_v30, %v155_v21  ;;  %vm162_vm1 = vweird.f32 %v2903_v30  ;;  %v2721_v21 = vld [vmem:[#allocation5 + $0xa4] sm:$0xf0] }
  0xc3   :  { %vm163_vm3 = vmor %vm161_vm2, %vm162_vm1  ;;  %v2015_v23 = vor.u32 %v2721_v21, %v2014_v20  ;;  %v2055_v20 = vor.u32 %v2729_v17, %v2054_v16  ;;  %v2059_v21 = vor.u32 %v2725_v18, %v2056_v19  ;;  %v2785_v16 = vld [vmem:[#allocation7 + $0x164] sm:$0xf0]  ;;  %v2358_v18 = vld [vmem:[#allocation7 + $0x1e0] sm:$0xf] }
  0xc4   :  { %v158_v36 = vsub.f32 1.0, %v157_v32  ;;  %v2801_v19 = vld [vmem:[#allocation7 + $0x1e4] sm:$0xf0] }
  0xc5   :  { %448 = vmatpush.bf16.msra.mxu2 %v2015_v23  ;;  %v2738_v23 = vld [vmem:[#allocation5 + $0x16c] sm:$0xf0] }
  0xc6   :  { %v159_v37 = vmul.f32 %v2903_v30, %v158_v36  ;;  %v1983_v36 = vor.u32 %v2713_v33, %v1982_v31  ;;  %v2095_v25 = vor.u32 %v2738_v23, %v2094_v22  ;;  %v2735_v31 = vld [vmem:[#allocation5 + $0x14c] sm:$0xf]  ;;  %v2359_v22 = vor.u32 %v2801_v19, %v2358_v18  ;;  %v2150_v23 = vld [vmem:[#allocation7 + $0x40] sm:$0xf]  ;;  %v2254_v18 = vld [vmem:[#allocation7 + $0x110] sm:$0xf] }
  0xc8   :  { %v160_v38 = vadd.f32 %v2903_v30, %v159_v37  ;;  %v1987_v37 = vor.u32 %v2709_v34, %v1984_v35  ;;  %v2062_v34 = vld [vmem:[#allocation5 + $0xe0] sm:$0xf]  ;;  %v2730_v35 = vld [vmem:[#allocation5 + $0x10c] sm:$0xf0] }
  0xc9   :  { %449 = vmatpush.bf16.msra.mxu2 %v1983_v36  ;;  %v2726_v36 = vld [vmem:[#allocation5 + $0xe4] sm:$0xf] }
  0xca   :  { %v164_v41 = vsel %vm163_vm3, %v2903_v30, %v160_v38  ;;  %v2024_v30 = vld [vmem:[#allocation5 + $0xb0] sm:$0xf0]  ;;  %v1990_v38 = vld [vmem:[#allocation5 + $0x20] sm:$0xf] }
  0xcb   :  { %v169_v43 = vsel %vm166_vm4, %v168_v42, %v164_v41  ;;  %v2027_v32 = vor.u32 %v2718_v29, %v2024_v30  ;;  %v1991_v41 = vor.u32 %v2714_v39, %v1990_v38  ;;  %v1992_v42 = vld [vmem:[#allocation5 + $0x50] sm:$0xf0]  ;;  %v2099_v29 = vor.u32 %v2734_v24, %v2096_v26  ;;  %v2070_v39 = vld [vmem:[#allocation5 + $0xe8] sm:$0xf] }
  0xcc   :  { %v2064_v38 = vld [vmem:[#allocation5 + $0x110] sm:$0xf0]  ;;  %v2749_v24 = vld [vmem:[#allocation7 + $0x44] sm:$0xf0] }
  0xcd   :  { %487 = vmatpush.bf16.msrb.mxu1 %v2027_v32  ;;  %475 = vmatpush.bf16.msrb.mxu0 %v1991_v41  ;;  %v2104_v32 = vld [vmem:[#allocation5 + $0x178] sm:$0xf0]  ;;  %v2067_v41 = vor.u32 %v2726_v36, %v2064_v38  ;;  %v2278_v36 = vld [vmem:[#allocation7 + $0x140] sm:$0xf]  ;;  %v2151_v38 = vor.u32 %v2749_v24, %v2150_v23  ;;  %v2318_v23 = vld [vmem:[#allocation7 + $0x190] sm:$0xf] }
  0xce   :  { %v2107_v33 = vor.u32 %v2735_v31, %v2104_v32  ;;  %v2765_v31 = vld [vmem:[#allocation7 + $0xc4] sm:$0xf0]  ;;  %v2799_v32 = vld [vmem:[#allocation7 + $0x1d4] sm:$0xf0] }
  0xcf   :  { %v2791_v24 = vld [vmem:[#allocation7 + $0x194] sm:$0xf0] }
 0x124   :  { %v173_v44 = vpop.permute.xlu0 %172 }
 0x125   :  { %v175_v45 = vmul.f32 %v173_v44, %v169_v43  ;;  %v1995_v43 = vor.u32 %v2710_v40, %v1992_v42  ;;  %v2898_v44 = vld [vmem:[#allocation10 + $0x1] ss:$0 sm:$0xff]  ;;  %v2731_v40 = vld [vmem:[#allocation5 + $0x114] sm:$0xf0] }
 0x126   :  { %v2071_v42 = vor.u32 %v2731_v40, %v2070_v39  ;;  %v2781_v39 = vld [vmem:[#allocation7 + $0x144] sm:$0xf0]  ;;  %v2342_v40 = vld [vmem:[#allocation7 + $0x1c0] sm:$0xf] }
 0x127   :  { %v184_v46 = vpack.c.bf16 %v175_v45, %v175_v45  ;;  %488 = vmatpush.bf16.msrb.mxu1 %v1995_v43  ;;  %v2727_v43 = vld [vmem:[#allocation5 + $0xec] sm:$0xf] }
 0x129   :  { %190 = vrot.lane.b32.xlu0 %v184_v46, %s3060_s30 }
 0x19b   :  { %v191_v59 = vpop.permute.xlu0 %190 }
 0x19c   :  { %1937 = vmatmul.msk.bf16.vlgmr.msra.gmra.mxu3 %vm134_vm0, %v191_v59 }
 0x19d   :  { %461 = vmatpush.bf16.msra.mxu3 %v2019_v27  ;;  %v2102_v27 = vld [vmem:[#allocation5 + $0x148] sm:$0xf] }
 0x19e   :  { %v2103_v30 = vor.u32 %v2739_v28, %v2102_v27  ;;  %v2286_v27 = vld [vmem:[#allocation7 + $0x150] sm:$0xf]  ;;  %v2783_v28 = vld [vmem:[#allocation7 + $0x154] sm:$0xf0] }
 0x1a1   :  { %462 = vmatpush.bf16.msra.mxu3 %v1987_v37  ;;  %v2063_v37 = vor.u32 %v2730_v35, %v2062_v34  ;;  %v2287_v34 = vor.u32 %v2783_v28, %v2286_v27  ;;  %v2741_v28 = vld [vmem:[#allocation7 + $0x4] sm:$0xf0] }
 0x21f   :  { %v228_v45 = vpop.f32.mrf.mxu3 }
 0x220   :  { %v229_v46 = vadd.f32 %v2898_v44, %v228_v45  ;;  %v2072_v44 = vld [vmem:[#allocation5 + $0x118] sm:$0xf0] }
 0x221   :  { %v2075_v45 = vor.u32 %v2727_v43, %v2072_v44  ;;  %v2142_v43 = vld [vmem:[#allocation7 + $0x30] sm:$0xf]  ;;  %v2747_v44 = vld [vmem:[#allocation7 + $0x34] sm:$0xf0] }
 0x222   :  { %v232_v49 = vmax.f32 %v229_v46, 0.0  ;;  %v2143_v55 = vor.u32 %v2747_v44, %v2142_v43 }
 0x224   :  { %v241_v52 = vpack.c.bf16 %v232_v49, %v232_v49 }
 0x226   :  { %537 = vrot.lane.b32.xlu1 %v241_v52, %s3067_s2  ;;  %1970 = vmatmul.msk.bf16.vlgmr.msrb.gmra.mxu2 %vm134_vm0, %v241_v52 }
 0x227   :  { %1971 = vmatmul.msk.bf16.vlgmr.msrb.gmra.mxu3 %vm134_vm0, %v241_v52  ;;  %2036 = vmatmul.msk.bf16.vlgmr.msra.gmra.mxu0 %vm413_vm5, %v241_v52  ;;  %v230_v59 = vpop.f32.mrf.mxu3 }
 0x228   :  { %2037 = vmatmul.msk.bf16.vlgmr.msra.gmra.mxu1 %vm413_vm5, %v241_v52  ;;  %500 = vmatpush.bf16.msrb.mxu2 %v2031_v53  ;;  %v2771_v59 = vld [vmem:[#allocation7 + $0xf4] sm:$0xf0] }
 0x229   :  { %513 = vmatpush.bf16.msrb.mxu3 %v2035_v54  ;;  %628 = vmatpush.bf16.msra.mxu0 %v2079_v0  ;;  %v2230_v0 = vld [vmem:[#allocation7 + $0xe0] sm:$0xf] }
 0x22a   :  { %641 = vmatpush.bf16.msra.mxu1 %v2083_v3 }
 0x22c   :  { %501 = vmatpush.bf16.msrb.mxu2 %v1999_v63  ;;  %v2239_v63 = vor.u32 %v2771_v59, %v2238_v57  ;;  %v2334_v57 = vld [vmem:[#allocation7 + $0x1b0] sm:$0xf] }
 0x22d   :  { %514 = vmatpush.bf16.msrb.mxu3 %v2003_v2  ;;  %629 = vmatpush.bf16.msra.mxu0 %v2047_v8  ;;  %v2302_v2 = vld [vmem:[#allocation7 + $0x170] sm:$0xf]  ;;  %v2231_v8 = vor.u32 %v2769_v1, %v2230_v0  ;;  %v2198_v0 = vld [vmem:[#allocation7 + $0xa0] sm:$0xf]  ;;  %v2761_v1 = vld [vmem:[#allocation7 + $0xa4] sm:$0xf0] }
 0x22e   :  { %642 = vmatpush.bf16.msra.mxu1 %v2051_v9  ;;  %v2303_v9 = vor.u32 %v2787_v5, %v2302_v2  ;;  %v2262_v5 = vld [vmem:[#allocation7 + $0x120] sm:$0xf] }
 0x236   :  { %2038 = vmatmul.msk.bf16.vlgmr.msra.gmra.mxu2 %vm413_vm5, %v241_v52 }
 0x237   :  { %2039 = vmatmul.msk.bf16.vlgmr.msra.gmra.mxu3 %vm413_vm5, %v241_v52  ;;  %2040 = vmatmul.msk.bf16.vlgmr.msrb.gmra.mxu0 %vm413_vm5, %v241_v52 }
 0x238   :  { %2041 = vmatmul.msk.bf16.vlgmr.msrb.gmra.mxu1 %vm413_vm5, %v241_v52  ;;  %654 = vmatpush.bf16.msra.mxu2 %v2087_v14  ;;  %v2767_v14 = vld [vmem:[#allocation7 + $0xd4] sm:$0xf0] }
 0x239   :  { %667 = vmatpush.bf16.msra.mxu3 %v2091_v15  ;;  %680 = vmatpush.bf16.msrb.mxu0 %v2095_v25  ;;  %v2294_v15 = vld [vmem:[#allocation7 + $0x160] sm:$0xf]  ;;  %v2223_v26 = vor.u32 %v2767_v14, %v2222_v13  ;;  %v2190_v13 = vld [vmem:[#allocation7 + $0x90] sm:$0xf]  ;;  %v2759_v14 = vld [vmem:[#allocation7 + $0x94] sm:$0xf0] }
 0x23a   :  { %693 = vmatpush.bf16.msrb.mxu1 %v2099_v29  ;;  %v2295_v17 = vor.u32 %v2785_v16, %v2294_v15  ;;  %v2350_v29 = vld [vmem:[#allocation7 + $0x1d0] sm:$0xf]  ;;  %v2263_v15 = vor.u32 %v2777_v7, %v2262_v5  ;;  %v2191_v27 = vor.u32 %v2759_v14, %v2190_v13  ;;  %v2865_v5 = vld [vmem:[#allocation7 + $0x3e4] sm:$0xf0] }
 0x23b   :  { %v2351_v35 = vor.u32 %v2799_v32, %v2350_v29  ;;  %v2182_v29 = vld [vmem:[#allocation7 + $0x80] sm:$0xf]  ;;  %v2819_v32 = vld [vmem:[#allocation7 + $0x274] sm:$0xf0]  ;;  %v2414_v7 = vld [vmem:[#allocation7 + $0x250] sm:$0xf] }
 0x23c   :  { %655 = vmatpush.bf16.msra.mxu2 %v2055_v20  ;;  %v2542_v13 = vld [vmem:[#allocation7 + $0x350] sm:$0xf] }
 0x23d   :  { %668 = vmatpush.bf16.msra.mxu3 %v2059_v21  ;;  %681 = vmatpush.bf16.msrb.mxu0 %v2063_v37  ;;  %v2159_v21 = vor.u32 %v2751_v12, %v2158_v11  ;;  %v2126_v11 = vld [vmem:[#allocation7 + $0x10] sm:$0xf]  ;;  %v2743_v12 = vld [vmem:[#allocation7 + $0x14] sm:$0xf0] }
 0x23e   :  { %694 = vmatpush.bf16.msrb.mxu1 %v2067_v41  ;;  %v2797_v41 = vld [vmem:[#allocation7 + $0x1c4] sm:$0xf0] }
 0x246   :  { %2042 = vmatmul.msk.bf16.vlgmr.msrb.gmra.mxu2 %vm413_vm5, %v241_v52 }
 0x247   :  { %2043 = vmatmul.msk.bf16.vlgmr.msrb.gmra.mxu3 %vm413_vm5, %v241_v52  ;;  %706 = vmatpush.bf16.msrb.mxu2 %v2103_v30  ;;  %v2214_v30 = vld [vmem:[#allocation7 + $0xc0] sm:$0xf] }
 0x248   :  { %719 = vmatpush.bf16.msrb.mxu3 %v2107_v33 }
 0x24b   :  { %707 = vmatpush.bf16.msrb.mxu2 %v2071_v42  ;;  %v2215_v42 = vor.u32 %v2765_v31, %v2214_v30  ;;  %v2757_v30 = vld [vmem:[#allocation7 + $0x84] sm:$0xf0]  ;;  %v2430_v31 = vld [vmem:[#allocation7 + $0x270] sm:$0xf] }
 0x24c   :  { %720 = vmatpush.bf16.msrb.mxu3 %v2075_v45  ;;  %v2206_v45 = vld [vmem:[#allocation7 + $0xb0] sm:$0xf]  ;;  %v2183_v43 = vor.u32 %v2757_v30, %v2182_v29  ;;  %v2431_v44 = vor.u32 %v2819_v32, %v2430_v31  ;;  %v2534_v29 = vld [vmem:[#allocation7 + $0x340] sm:$0xf]  ;;  %v2845_v31 = vld [vmem:[#allocation7 + $0x344] sm:$0xf0] }
 0x24d   :  { %v2598_v32 = vld [vmem:[#allocation7 + $0x3c0] sm:$0xf] }
 0x298   :  { %v538_v46 = vpop.permute.xlu1 %537 }
 0x299   :  { %2108 = vmatmul.msk.bf16.vlgmr.msra.gmra.mxu0 %vm413_vm5, %v538_v46  ;;  %2109 = vmatmul.msk.bf16.vlgmr.msra.gmra.mxu1 %vm413_vm5, %v538_v46 }
 0x29a   :  { %2110 = vmatmul.msk.bf16.vlgmr.msra.gmra.mxu2 %vm413_vm5, %v538_v46  ;;  %2111 = vmatmul.msk.bf16.vlgmr.msra.gmra.mxu3 %vm413_vm5, %v538_v46 }
 0x29b   :  { %1510 = vmatpush.bf16.msra.mxu0 %v2175_v58  ;;  %1523 = vmatpush.bf16.msra.mxu1 %v2239_v63  ;;  %v2795_v58 = vld [vmem:[#allocation7 + $0x1b4] sm:$0xf0]  ;;  %v2745_v63 = vld [vmem:[#allocation7 + $0x24] sm:$0xf0] }
 0x29c   :  { %1536 = vmatpush.bf16.msra.mxu2 %v2303_v9  ;;  %1549 = vmatpush.bf16.msra.mxu3 %v2367_v10  ;;  %v2135_v6 = vor.u32 %v2745_v63, %v2134_v61  ;;  %v2793_v9 = vld [vmem:[#allocation7 + $0x1a4] sm:$0xf0]  ;;  %v2199_v10 = vor.u32 %v2761_v1, %v2198_v0  ;;  %v2550_v63 = vld [vmem:[#allocation7 + $0x360] sm:$0xf] }
 0x29f   :  { %1511 = vmatpush.bf16.msra.mxu0 %v2167_v4  ;;  %1524 = vmatpush.bf16.msra.mxu1 %v2231_v8  ;;  %v2335_v4 = vor.u32 %v2795_v58, %v2334_v57  ;;  %v2326_v8 = vld [vmem:[#allocation7 + $0x1a0] sm:$0xf] }
 0x2a0   :  { %1537 = vmatpush.bf16.msra.mxu2 %v2295_v17  ;;  %1550 = vmatpush.bf16.msra.mxu3 %v2359_v22  ;;  %v2327_v16 = vor.u32 %v2793_v9, %v2326_v8  ;;  %v2118_v17 = vld [vmem:[#allocation7] sm:$0xf]  ;;  %v2775_v22 = vld [vmem:[#allocation7 + $0x114] sm:$0xf0]  ;;  %v2478_v9 = vld [vmem:[#allocation7 + $0x2d0] sm:$0xf] }
 0x2a1   :  { %v2815_v8 = vld [vmem:[#allocation7 + $0x254] sm:$0xf0] }
 0x2a2   :  { %v2415_v14 = vor.u32 %v2815_v8, %v2414_v7  ;;  %v2857_v7 = vld [vmem:[#allocation7 + $0x3a4] sm:$0xf0] }
 0x2a3   :  { %1512 = vmatpush.bf16.msra.mxu0 %v2159_v21  ;;  %1525 = vmatpush.bf16.msra.mxu1 %v2223_v26  ;;  %v2127_v21 = vor.u32 %v2743_v12, %v2126_v11 }
 0x2a4   :  { %v3134_v47 = vpop.f32.mrf.mxu0  ;;  %1538 = vmatpush.bf16.msra.mxu2 %v2287_v34  ;;  %1551 = vmatpush.bf16.msra.mxu3 %v2351_v35  ;;  %v2835_v34 = vld [vmem:[#allocation7 + $0x2f4] sm:$0xf0]  ;;  %v2255_v35 = vor.u32 %v2775_v22, %v2254_v18  ;;  %v2813_v22 = vld [vmem:[#allocation7 + $0x244] sm:$0xf0] }
 0x2a5   :  { %v3136_v48 = vpop.f32.mrf.mxu1 }
 0x2a7   :  { %1513 = vmatpush.bf16.msra.mxu0 %v2151_v38  ;;  %1526 = vmatpush.bf16.msra.mxu1 %v2215_v42  ;;  %v2773_v38 = vld [vmem:[#allocation7 + $0x104] sm:$0xf0]  ;;  %v2558_v42 = vld [vmem:[#allocation7 + $0x370] sm:$0xf] }
 0x2a9   :  { %v3138_v49 = vpop.f32.mrf.mxu2  ;;  %2112 = vmatmul.msk.bf16.vlgmr.msrb.gmra.mxu0 %vm413_vm5, %v538_v46  ;;  %2113 = vmatmul.msk.bf16.vlgmr.msrb.gmra.mxu1 %vm413_vm5, %v538_v46 }
 0x2aa   :  { %v3142_v50 = vpop.f32.mrf.mxu3  ;;  %2114 = vmatmul.msk.bf16.vlgmr.msrb.gmra.mxu2 %vm413_vm5, %v538_v46  ;;  %2115 = vmatmul.msk.bf16.vlgmr.msrb.gmra.mxu3 %vm413_vm5, %v538_v46  ;;  %v2763_v46 = vld [vmem:[#allocation7 + $0xb4] sm:$0xf0] }
 0x2ab   :  { %v2207_v60 = vor.u32 %v2763_v46, %v2206_v45  ;;  %1514 = vmatpush.bf16.msra.mxu0 %v2143_v55  ;;  %v2851_v45 = vld [vmem:[#allocation7 + $0x374] sm:$0xf0]  ;;  %v2622_v46 = vld [vmem:[#allocation7 + $0x3f0] sm:$0xf]  ;;  %v2486_v55 = vld [vmem:[#allocation7 + $0x2e0] sm:$0xf] }
 0x2ac   :  { %v427_v51 = vpop.f32.mrf.mxu0 }
 0x2ad   :  { %v440_v52 = vpop.f32.mrf.mxu1  ;;  %v2279_v51 = vor.u32 %v2781_v39, %v2278_v36  ;;  %1527 = vmatpush.bf16.msra.mxu1 %v2207_v60  ;;  %v2319_v36 = vor.u32 %v2791_v24, %v2318_v23  ;;  %v2119_v39 = vor.u32 %v2741_v28, %v2118_v17  ;;  %v2559_v60 = vor.u32 %v2851_v45, %v2558_v42  ;;  %v2863_v17 = vld [vmem:[#allocation7 + $0x3d4] sm:$0xf0]  ;;  %v2470_v23 = vld [vmem:[#allocation7 + $0x2c0] sm:$0xf]  ;;  %v2829_v24 = vld [vmem:[#allocation7 + $0x2c4] sm:$0xf0] }
 0x2ae   :  { %v2343_v52 = vor.u32 %v2797_v41, %v2342_v40  ;;  %v2310_v40 = vld [vmem:[#allocation7 + $0x180] sm:$0xf]  ;;  %v2789_v41 = vld [vmem:[#allocation7 + $0x184] sm:$0xf0]  ;;  %v2859_v45 = vld [vmem:[#allocation7 + $0x3b4] sm:$0xf0] }
 0x2af   :  { %1539 = vmatpush.bf16.msra.mxu2 %v2279_v51  ;;  %1515 = vmatpush.bf16.msra.mxu0 %v2135_v6  ;;  %v2867_v51 = vld [vmem:[#allocation7 + $0x3f4] sm:$0xf0]  ;;  %v2311_v58 = vor.u32 %v2789_v41, %v2310_v40  ;;  %v2526_v41 = vld [vmem:[#allocation7 + $0x330] sm:$0xf] }
 0x2b0   :  { %1552 = vmatpush.bf16.msra.mxu3 %v2343_v52  ;;  %v2623_v61 = vor.u32 %v2867_v51, %v2622_v46  ;;  %v2390_v51 = vld [vmem:[#allocation7 + $0x220] sm:$0xf] }
 0x2b1   :  { %v302_v53 = vpop.f32.mrf.mxu2  ;;  %1528 = vmatpush.bf16.msra.mxu1 %v2199_v10  ;;  %v2831_v10 = vld [vmem:[#allocation7 + $0x2d4] sm:$0xf0] }
 0x2b2   :  { %v315_v54 = vpop.f32.mrf.mxu3  ;;  %v2270_v53 = vld [vmem:[#allocation7 + $0x130] sm:$0xf]  ;;  %v2479_v18 = vor.u32 %v2831_v10, %v2478_v9  ;;  %v2374_v9 = vld [vmem:[#allocation7 + $0x200] sm:$0xf]  ;;  %v2805_v10 = vld [vmem:[#allocation7 + $0x204] sm:$0xf0] }
 0x2b3   :  { %v2271_v2 = vor.u32 %v2779_v56, %v2270_v53  ;;  %1516 = vmatpush.bf16.msra.mxu0 %v2127_v21  ;;  %v2422_v53 = vld [vmem:[#allocation7 + $0x260] sm:$0xf]  ;;  %v2833_v56 = vld [vmem:[#allocation7 + $0x2e4] sm:$0xf0] }
 0x2b4   :  { %v3146_v62 = vpop.f32.mrf.mxu0  ;;  %1553 = vmatpush.bf16.msra.mxu3 %v2335_v4  ;;  %v2614_v4 = vld [vmem:[#allocation7 + $0x3e0] sm:$0xf]  ;;  %v2487_v6 = vor.u32 %v2833_v56, %v2486_v55 }
 0x2b5   :  { %v3148_v3 = vpop.f32.mrf.mxu1  ;;  %1540 = vmatpush.bf16.msra.mxu2 %v2271_v2  ;;  %1529 = vmatpush.bf16.msra.mxu1 %v2191_v27  ;;  %v2849_v2 = vld [vmem:[#allocation7 + $0x364] sm:$0xf0]  ;;  %v2615_v12 = vor.u32 %v2865_v5, %v2614_v4  ;;  %v2406_v21 = vld [vmem:[#allocation7 + $0x240] sm:$0xf] }
 0x2b6   :  { %v2551_v11 = vor.u32 %v2849_v2, %v2550_v63  ;;  %v2407_v30 = vor.u32 %v2813_v22, %v2406_v21  ;;  %v2518_v2 = vld [vmem:[#allocation7 + $0x320] sm:$0xf]  ;;  %v2841_v4 = vld [vmem:[#allocation7 + $0x324] sm:$0xf0] }
 0x2b7   :  { %1517 = vmatpush.bf16.msra.mxu0 %v2119_v39  ;;  %v2535_v39 = vor.u32 %v2845_v31, %v2534_v29  ;;  %v2582_v5 = vld [vmem:[#allocation7 + $0x3a0] sm:$0xf]  ;;  %v2853_v29 = vld [vmem:[#allocation7 + $0x384] sm:$0xf0]  ;;  %v2754_v31 = vld [vmem:[#allocation7 + $0x74] sm:$0xf] }
 0x2b8   :  { %1554 = vmatpush.bf16.msra.mxu3 %v2327_v16  ;;  %v2606_v16 = vld [vmem:[#allocation7 + $0x3d0] sm:$0xf]  ;;  %v2583_v8 = vor.u32 %v2857_v7, %v2582_v5  ;;  %v2296_v7 = vld [vmem:[#allocation7 + $0x168] sm:$0xf0] }
 0x2b9   :  { %v3150_v20 = vpop.f32.mrf.mxu2  ;;  %1541 = vmatpush.bf16.msra.mxu2 %v2263_v15  ;;  %1530 = vmatpush.bf16.msra.mxu1 %v2183_v43  ;;  %v2847_v15 = vld [vmem:[#allocation7 + $0x354] sm:$0xf0]  ;;  %v2607_v28 = vor.u32 %v2863_v17, %v2606_v16  ;;  %v2574_v17 = vld [vmem:[#allocation7 + $0x390] sm:$0xf] }
 0x2ba   :  { %v3152_v25 = vpop.f32.mrf.mxu3  ;;  %v2543_v27 = vor.u32 %v2847_v15, %v2542_v13  ;;  %v2843_v43 = vld [vmem:[#allocation7 + $0x334] sm:$0xf0]  ;;  %v2821_v13 = vld [vmem:[#allocation7 + $0x284] sm:$0xf0]  ;;  %v2510_v15 = vld [vmem:[#allocation7 + $0x310] sm:$0xf] }
 0x2bb   :  { %1562 = vmatpush.bf16.msrb.mxu0 %v2431_v44  ;;  %v2590_v44 = vld [vmem:[#allocation7 + $0x3b0] sm:$0xf]  ;;  %v2527_v55 = vor.u32 %v2843_v43, %v2526_v41  ;;  %v2839_v16 = vld [vmem:[#allocation7 + $0x314] sm:$0xf0]  ;;  %v2752_v41 = vld [vmem:[#allocation7 + $0x64] sm:$0xf] }
 0x2bc   :  { %v479_v33 = vpop.f32.mrf.mxu0  ;;  %1555 = vmatpush.bf16.msra.mxu3 %v2319_v36  ;;  %v2811_v36 = vld [vmem:[#allocation7 + $0x234] sm:$0xf0]  ;;  %v2591_v56 = vor.u32 %v2859_v45, %v2590_v44  ;;  %v2511_v21 = vor.u32 %v2839_v16, %v2510_v15  ;;  %v2168_v44 = vld [vmem:[#allocation7 + $0x68] sm:$0xf0]  ;;  %v2768_v45 = vld [vmem:[#allocation7 + $0xe4] sm:$0xf] }
 0x2bd   :  { %v492_v37 = vpop.f32.mrf.mxu1  ;;  %v2494_v33 = vld [vmem:[#allocation7 + $0x2f0] sm:$0xf]  ;;  %1542 = vmatpush.bf16.msra.mxu2 %v2255_v35 }
 0x2be   :  { %v2246_v37 = vld [vmem:[#allocation7 + $0x100] sm:$0xf]  ;;  %v2495_v52 = vor.u32 %v2835_v34, %v2494_v33  ;;  %v2861_v33 = vld [vmem:[#allocation7 + $0x3c4] sm:$0xf0]  ;;  %v2471_v34 = vor.u32 %v2829_v24, %v2470_v23  ;;  %v2398_v35 = vld [vmem:[#allocation7 + $0x230] sm:$0xf] }
 0x2bf   :  { %v2247_v57 = vor.u32 %v2773_v38, %v2246_v37  ;;  %v2462_v37 = vld [vmem:[#allocation7 + $0x2b0] sm:$0xf]  ;;  %v2827_v38 = vld [vmem:[#allocation7 + $0x2b4] sm:$0xf0]  ;;  %v2599_v40 = vor.u32 %v2861_v33, %v2598_v32  ;;  %v2399_v42 = vor.u32 %v2811_v36, %v2398_v35  ;;  %v2502_v23 = vld [vmem:[#allocation7 + $0x300] sm:$0xf] }
 0x2c0   :  { %1575 = vmatpush.bf16.msrb.mxu1 %v2495_v52  ;;  %1556 = vmatpush.bf16.msra.mxu3 %v2311_v58  ;;  %v2463_v46 = vor.u32 %v2827_v38, %v2462_v37  ;;  %v2809_v52 = vld [vmem:[#allocation7 + $0x224] sm:$0xf0]  ;;  %v2176_v32 = vld [vmem:[#allocation7 + $0x78] sm:$0xf0]  ;;  %v2770_v33 = vld [vmem:[#allocation7 + $0xf4] sm:$0xf] }
 0x2c1   :  { %v453_v54 = vpop.f32.mrf.mxu2  ;;  %1543 = vmatpush.bf16.msra.mxu2 %v2247_v57  ;;  %v2391_v57 = vor.u32 %v2809_v52, %v2390_v51  ;;  %v2837_v24 = vld [vmem:[#allocation7 + $0x304] sm:$0xf0]  ;;  %v2786_v51 = vld [vmem:[#allocation7 + $0x174] sm:$0xf]  ;;  %v2304_v52 = vld [vmem:[#allocation7 + $0x178] sm:$0xf0] }
 0x2c2   :  { %v466_v59 = vpop.f32.mrf.mxu3  ;;  %v2817_v54 = vld [vmem:[#allocation7 + $0x264] sm:$0xf0] }
 0x2c3   :  { %v2423_v1 = vor.u32 %v2817_v54, %v2422_v53  ;;  %v2454_v53 = vld [vmem:[#allocation7 + $0x2a0] sm:$0xf]  ;;  %v2825_v54 = vld [vmem:[#allocation7 + $0x2a4] sm:$0xf0] }
 0x2c4   :  { %1601 = vmatpush.bf16.msrb.mxu3 %v2623_v61  ;;  %1576 = vmatpush.bf16.msrb.mxu1 %v2487_v6  ;;  %v2455_v58 = vor.u32 %v2825_v54, %v2454_v53  ;;  %v2446_v61 = vld [vmem:[#allocation7 + $0x290] sm:$0xf]  ;;  %v2519_v6 = vor.u32 %v2841_v4, %v2518_v2  ;;  %v2802_v53 = vld [vmem:[#allocation7 + $0x1f4] sm:$0xf]  ;;  %v2368_v54 = vld [vmem:[#allocation7 + $0x1f8] sm:$0xf0]  ;;  %v2307_v2 = vor.u32 %v2786_v51, %v2304_v52 }
 0x2c5   :  { %1588 = vmatpush.bf16.msrb.mxu2 %v2559_v60  ;;  %1563 = vmatpush.bf16.msrb.mxu0 %v2423_v1  ;;  %v2807_v60 = vld [vmem:[#allocation7 + $0x214] sm:$0xf0]  ;;  %v2371_v4 = vor.u32 %v2802_v53, %v2368_v54  ;;  %v2744_v53 = vld [vmem:[#allocation7 + $0x24] sm:$0xf]  ;;  %v2200_v54 = vld [vmem:[#allocation7 + $0xa8] sm:$0xf0] }
 0x2c8   :  { %1602 = vmatpush.bf16.msrb.mxu3 %v2615_v12  ;;  %1577 = vmatpush.bf16.msrb.mxu1 %v2479_v18  ;;  %v2375_v12 = vor.u32 %v2805_v10, %v2374_v9  ;;  %v2855_v18 = vld [vmem:[#allocation7 + $0x394] sm:$0xf0] }
 0x2c9   :  { %v3154_v19 = vpop.f32.mrf.mxu2  ;;  %1589 = vmatpush.bf16.msrb.mxu2 %v2551_v11  ;;  %1564 = vmatpush.bf16.msrb.mxu0 %v2415_v14  ;;  %v2438_v11 = vld [vmem:[#allocation7 + $0x280] sm:$0xf]  ;;  %v2575_v22 = vor.u32 %v2855_v18, %v2574_v17  ;;  %v2782_v17 = vld [vmem:[#allocation7 + $0x154] sm:$0xf]  ;;  %v2288_v18 = vld [vmem:[#allocation7 + $0x158] sm:$0xf0] }
 0x2ca   :  { %v3156_v26 = vpop.f32.mrf.mxu3  ;;  %v2439_v14 = vor.u32 %v2821_v13, %v2438_v11  ;;  %v2800_v11 = vld [vmem:[#allocation7 + $0x1e4] sm:$0xf] }
 0x2cb   :  { %v2748_v13 = vld [vmem:[#allocation7 + $0x44] sm:$0xf] }
 0x2cc   :  { %1603 = vmatpush.bf16.msrb.mxu3 %v2607_v28  ;;  %1578 = vmatpush.bf16.msrb.mxu1 %v2471_v34  ;;  %v2566_v28 = vld [vmem:[#allocation7 + $0x380] sm:$0xf]  ;;  %v2240_v34 = vld [vmem:[#allocation7 + $0xf8] sm:$0xf0] }
 0x2cd   :  { %1590 = vmatpush.bf16.msrb.mxu2 %v2543_v27  ;;  %1565 = vmatpush.bf16.msrb.mxu0 %v2407_v30  ;;  %v2503_v27 = vor.u32 %v2837_v24, %v2502_v23  ;;  %v2567_v30 = vor.u32 %v2853_v29, %v2566_v28  ;;  %v2798_v23 = vld [vmem:[#allocation7 + $0x1d4] sm:$0xf]  ;;  %v2352_v24 = vld [vmem:[#allocation7 + $0x1d8] sm:$0xf0] }
 0x2ce   :  { %v2746_v29 = vld [vmem:[#allocation7 + $0x34] sm:$0xf] }
 0x2d0   :  { %1604 = vmatpush.bf16.msrb.mxu3 %v2599_v40  ;;  %1579 = vmatpush.bf16.msrb.mxu1 %v2463_v46  ;;  %v2243_v40 = vor.u32 %v2770_v33, %v2240_v34  ;;  %v2232_v46 = vld [vmem:[#allocation7 + $0xe8] sm:$0xf0]  ;;  %v2144_v33 = vld [vmem:[#allocation7 + $0x38] sm:$0xf0]  ;;  %v2762_v34 = vld [vmem:[#allocation7 + $0xb4] sm:$0xf] }
 0x2d1   :  { %v505_v59 = vpop.f32.mrf.mxu2  ;;  %1591 = vmatpush.bf16.msrb.mxu2 %v2535_v39  ;;  %1566 = vmatpush.bf16.msrb.mxu0 %v2399_v42  ;;  %v2179_v39 = vor.u32 %v2754_v31, %v2176_v32  ;;  %v2291_v32 = vor.u32 %v2782_v17, %v2288_v18  ;;  %v2147_v51 = vor.u32 %v2746_v29, %v2144_v33  ;;  %v2740_v17 = vld [vmem:[#allocation7 + $0x4] sm:$0xf]  ;;  %v2120_v18 = vld [vmem:[#allocation7 + $0x8] sm:$0xf0]  ;;  %v2834_v29 = vld [vmem:[#allocation7 + $0x2f4] sm:$0xf] }
 0x2d2   :  { %v518_v0 = vpop.f32.mrf.mxu3  ;;  %v2382_v59 = vld [vmem:[#allocation7 + $0x210] sm:$0xf]  ;;  %v2790_v33 = vld [vmem:[#allocation7 + $0x194] sm:$0xf] }
 0x2d3   :  { %v2383_v63 = vor.u32 %v2807_v60, %v2382_v59  ;;  %v2823_v0 = vld [vmem:[#allocation7 + $0x294] sm:$0xf0]  ;;  %v2766_v59 = vld [vmem:[#allocation7 + $0xd4] sm:$0xf]  ;;  %v2224_v60 = vld [vmem:[#allocation7 + $0xd8] sm:$0xf0] }
 0x2d4   :  { %1605 = vmatpush.bf16.msrb.mxu3 %v2591_v56  ;;  %1580 = vmatpush.bf16.msrb.mxu1 %v2455_v58  ;;  %v2447_v1 = vor.u32 %v2823_v0, %v2446_v61  ;;  %v2160_v56 = vld [vmem:[#allocation7 + $0x58] sm:$0xf0]  ;;  %v2227_v10 = vor.u32 %v2766_v59, %v2224_v60 }
 0x2d5   :  { %1592 = vmatpush.bf16.msrb.mxu2 %v2527_v55  ;;  %1567 = vmatpush.bf16.msrb.mxu0 %v2391_v57  ;;  %v2750_v55 = vld [vmem:[#allocation7 + $0x54] sm:$0xf] }
 0x2d6   :  { %v2163_v5 = vor.u32 %v2750_v55, %v2160_v56  ;;  %v2778_v55 = vld [vmem:[#allocation7 + $0x134] sm:$0xf]  ;;  %v2272_v56 = vld [vmem:[#allocation7 + $0x138] sm:$0xf0] }
 0x2d8   :  { %1581 = vmatpush.bf16.msrb.mxu1 %v2447_v1  ;;  %1606 = vmatpush.bf16.msrb.mxu3 %v2583_v8 }
 0x2d9   :  { %1568 = vmatpush.bf16.msrb.mxu0 %v2383_v63  ;;  %1593 = vmatpush.bf16.msrb.mxu2 %v2519_v6  ;;  %v2784_v6 = vld [vmem:[#allocation7 + $0x164] sm:$0xf] }
 0x2da   :  { %v2299_v15 = vor.u32 %v2784_v6, %v2296_v7  ;;  %v2128_v6 = vld [vmem:[#allocation7 + $0x18] sm:$0xf0]  ;;  %v2758_v7 = vld [vmem:[#allocation7 + $0x94] sm:$0xf] }
 0x2dc   :  { %1582 = vmatpush.bf16.msrb.mxu1 %v2439_v14  ;;  %1607 = vmatpush.bf16.msrb.mxu3 %v2575_v22  ;;  %v2764_v14 = vld [vmem:[#allocation7 + $0xc4] sm:$0xf] }
 0x2dd   :  { %1569 = vmatpush.bf16.msrb.mxu0 %v2375_v12  ;;  %1594 = vmatpush.bf16.msrb.mxu2 %v2511_v21  ;;  %v2360_v12 = vld [vmem:[#allocation7 + $0x1e8] sm:$0xf0] }
 0x2de   :  { %v2363_v16 = vor.u32 %v2800_v11, %v2360_v12  ;;  %v2275_v11 = vor.u32 %v2778_v55, %v2272_v56  ;;  %v2850_v55 = vld [vmem:[#allocation7 + $0x374] sm:$0xf]  ;;  %v2560_v56 = vld [vmem:[#allocation7 + $0x378] sm:$0xf0] }
 0x2e0   :  { %1608 = vmatpush.bf16.msrb.mxu3 %v2567_v30 }
 0x2e1   :  { %1595 = vmatpush.bf16.msrb.mxu2 %v2503_v27 }
 0x316   :  { %v631_v35 = vpop.f32.mrf.mxu0  ;;  %v644_v36 = vpop.f32.mrf.mxu1 }
 0x317   :  { %v726_v37 = vmul.f32 %v631_v35, %v3134_v47  ;;  %v727_v38 = vmul.f32 %v644_v36, %v3136_v48  ;;  %v2171_v47 = vor.u32 %v2752_v41, %v2168_v44  ;;  %v2235_v48 = vor.u32 %v2768_v45, %v2232_v46  ;;  %v2208_v35 = vld [vmem:[#allocation7 + $0xb8] sm:$0xf0]  ;;  %v2796_v41 = vld [vmem:[#allocation7 + $0x1c4] sm:$0xf]  ;;  %v2344_v44 = vld [vmem:[#allocation7 + $0x1c8] sm:$0xf0] }
 0x318   :  { %v2211_v52 = vor.u32 %v2762_v34, %v2208_v35  ;;  %v2320_v34 = vld [vmem:[#allocation7 + $0x198] sm:$0xf0] }
 0x319   :  { %v3160_v42 = vpack.c.bf16 %v726_v37, %v726_v37  ;;  %v3162_v43 = vpack.c.bf16 %v727_v38, %v727_v38  ;;  %v2355_v38 = vor.u32 %v2798_v23, %v2352_v24  ;;  %v2818_v23 = vld [vmem:[#allocation7 + $0x274] sm:$0xf]  ;;  %v2432_v24 = vld [vmem:[#allocation7 + $0x278] sm:$0xf0] }
 0x31b   :  { %1518 = vmatmul.bf16.vlgmr.msra.gmra.mxu0 %v3160_v42  ;;  %1531 = vmatmul.bf16.vlgmr.msra.gmra.mxu1 %v3162_v43 }
 0x31c   :  { %1614 = vmatpush.bf16.msra.mxu0 %v2179_v39  ;;  %1627 = vmatpush.bf16.msra.mxu1 %v2243_v40  ;;  %v2780_v39 = vld [vmem:[#allocation7 + $0x144] sm:$0xf]  ;;  %v2280_v40 = vld [vmem:[#allocation7 + $0x148] sm:$0xf0] }
 0x31d   :  { %v657_v57 = vpop.f32.mrf.mxu2  ;;  %v670_v58 = vpop.f32.mrf.mxu3 }
 0x31e   :  { %v728_v61 = vmul.f32 %v657_v57, %v3150_v20  ;;  %v729_v63 = vmul.f32 %v670_v58, %v3152_v25  ;;  %v633_v0 = vpop.f32.mrf.mxu0  ;;  %v646_v1 = vpop.f32.mrf.mxu1  ;;  %v2152_v20 = vld [vmem:[#allocation7 + $0x48] sm:$0xf0]  ;;  %v2794_v57 = vld [vmem:[#allocation7 + $0x1b4] sm:$0xf]  ;;  %v2336_v58 = vld [vmem:[#allocation7 + $0x1b8] sm:$0xf0] }
 0x31f   :  { %v2216_v25 = vld [vmem:[#allocation7 + $0xc8] sm:$0xf0]  ;;  %v2155_v21 = vor.u32 %v2748_v13, %v2152_v20  ;;  %v2742_v0 = vld [vmem:[#allocation7 + $0x14] sm:$0xf]  ;;  %v2339_v12 = vor.u32 %v2794_v57, %v2336_v58  ;;  %v2776_v13 = vld [vmem:[#allocation7 + $0x124] sm:$0xf] }
 0x320   :  { %v3168_v8 = vpack.c.bf16 %v728_v61, %v728_v61  ;;  %v3170_v9 = vpack.c.bf16 %v729_v63, %v729_v63  ;;  %1615 = vmatpush.bf16.msra.mxu0 %v2171_v47  ;;  %1628 = vmatpush.bf16.msra.mxu1 %v2235_v48  ;;  %v2219_v22 = vor.u32 %v2764_v14, %v2216_v25  ;;  %v2136_v47 = vld [vmem:[#allocation7 + $0x28] sm:$0xf0]  ;;  %v2760_v48 = vld [vmem:[#allocation7 + $0xa4] sm:$0xf]  ;;  %v2866_v57 = vld [vmem:[#allocation7 + $0x3f4] sm:$0xf] }
 0x321   :  { %v2139_v61 = vor.u32 %v2744_v53, %v2136_v47  ;;  %v2203_v63 = vor.u32 %v2760_v48, %v2200_v54  ;;  %v2264_v25 = vld [vmem:[#allocation7 + $0x128] sm:$0xf0]  ;;  %v2323_v53 = vor.u32 %v2790_v33, %v2320_v34  ;;  %v2772_v48 = vld [vmem:[#allocation7 + $0x104] sm:$0xf]  ;;  %v2624_v58 = vld [vmem:[#allocation7 + $0x3f8] sm:$0xf0] }
 0x322   :  { %1544 = vmatmul.bf16.vlgmr.msra.gmra.mxu2 %v3168_v8  ;;  %1557 = vmatmul.bf16.vlgmr.msra.gmra.mxu3 %v3170_v9  ;;  %v2488_v47 = vld [vmem:[#allocation7 + $0x2e8] sm:$0xf0]  ;;  %v2844_v33 = vld [vmem:[#allocation7 + $0x344] sm:$0xf] }
 0x323   :  { %1640 = vmatpush.bf16.msra.mxu2 %v2307_v2  ;;  %1653 = vmatpush.bf16.msra.mxu3 %v2371_v4  ;;  %v2248_v54 = vld [vmem:[#allocation7 + $0x108] sm:$0xf0] }
 0x324   :  { %1616 = vmatpush.bf16.msra.mxu0 %v2163_v5  ;;  %1629 = vmatpush.bf16.msra.mxu1 %v2227_v10  ;;  %v2192_v10 = vld [vmem:[#allocation7 + $0x98] sm:$0xf0]  ;;  %v2536_v34 = vld [vmem:[#allocation7 + $0x348] sm:$0xf0] }
 0x325   :  { %v659_v27 = vpop.f32.mrf.mxu2  ;;  %v672_v28 = vpop.f32.mrf.mxu3 }
 0x326   :  { %v683_v30 = vpop.f32.mrf.mxu0  ;;  %v696_v31 = vpop.f32.mrf.mxu1  ;;  %v2267_v27 = vor.u32 %v2776_v13, %v2264_v25 }
 0x327   :  { %1641 = vmatpush.bf16.msra.mxu2 %v2299_v15  ;;  %1654 = vmatpush.bf16.msra.mxu3 %v2363_v16  ;;  %v730_v36 = vmul.f32 %v683_v30, %v3146_v62  ;;  %v731_v37 = vmul.f32 %v696_v31, %v3148_v3  ;;  %v2283_v62 = vor.u32 %v2780_v39, %v2280_v40  ;;  %v2792_v15 = vld [vmem:[#allocation7 + $0x1a4] sm:$0xf]  ;;  %v2328_v16 = vld [vmem:[#allocation7 + $0x1a8] sm:$0xf0]  ;;  %v2496_v30 = vld [vmem:[#allocation7 + $0x2f8] sm:$0xf0] }
 0x328   :  { %1617 = vmatpush.bf16.msra.mxu0 %v2155_v21  ;;  %1630 = vmatpush.bf16.msra.mxu1 %v2219_v22  ;;  %v2347_v3 = vor.u32 %v2796_v41, %v2344_v44  ;;  %v2756_v21 = vld [vmem:[#allocation7 + $0x84] sm:$0xf]  ;;  %v2184_v22 = vld [vmem:[#allocation7 + $0x88] sm:$0xf0]  ;;  %v2331_v28 = vor.u32 %v2792_v15, %v2328_v16  ;;  %v2774_v31 = vld [vmem:[#allocation7 + $0x114] sm:$0xf]  ;;  %v2435_v39 = vor.u32 %v2818_v23, %v2432_v24 }
 0x329   :  { %v3176_v45 = vpack.c.bf16 %v730_v36, %v730_v36  ;;  %v3178_v46 = vpack.c.bf16 %v731_v37, %v731_v37  ;;  %v2123_v37 = vor.u32 %v2740_v17, %v2120_v18  ;;  %v2499_v40 = vor.u32 %v2834_v29, %v2496_v30  ;;  %v2816_v41 = vld [vmem:[#allocation7 + $0x264] sm:$0xf]  ;;  %v2424_v44 = vld [vmem:[#allocation7 + $0x268] sm:$0xf0]  ;;  %v2846_v17 = vld [vmem:[#allocation7 + $0x354] sm:$0xf] }
 0x32a   :  { %v2812_v15 = vld [vmem:[#allocation7 + $0x244] sm:$0xf]  ;;  %v2408_v16 = vld [vmem:[#allocation7 + $0x248] sm:$0xf0]  ;;  %v2544_v18 = vld [vmem:[#allocation7 + $0x358] sm:$0xf0] }
 0x32b   :  { %1642 = vmatpush.bf16.msra.mxu2 %v2291_v32  ;;  %1655 = vmatpush.bf16.msra.mxu3 %v2355_v38  ;;  %v2256_v32 = vld [vmem:[#allocation7 + $0x118] sm:$0xf0]  ;;  %v2187_v38 = vor.u32 %v2756_v21, %v2184_v22  ;;  %v2862_v21 = vld [vmem:[#allocation7 + $0x3d4] sm:$0xf]  ;;  %v2411_v23 = vor.u32 %v2812_v15, %v2408_v16 }
 0x32c   :  { %1570 = vmatmul.bf16.vlgmr.msrb.gmra.mxu0 %v3176_v45  ;;  %1583 = vmatmul.bf16.vlgmr.msrb.gmra.mxu1 %v3178_v46  ;;  %v2608_v22 = vld [vmem:[#allocation7 + $0x3d8] sm:$0xf0]  ;;  %v2826_v29 = vld [vmem:[#allocation7 + $0x2b4] sm:$0xf] }
 0x32d   :  { %1618 = vmatpush.bf16.msra.mxu0 %v2147_v51  ;;  %1631 = vmatpush.bf16.msra.mxu1 %v2211_v52  ;;  %v709_v59 = vpop.f32.mrf.mxu2  ;;  %v722_v60 = vpop.f32.mrf.mxu3  ;;  %v2832_v51 = vld [vmem:[#allocation7 + $0x2e4] sm:$0xf]  ;;  %v2259_v52 = vor.u32 %v2774_v31, %v2256_v32  ;;  %v2464_v30 = vld [vmem:[#allocation7 + $0x2b8] sm:$0xf0]  ;;  %v2547_v31 = vor.u32 %v2846_v17, %v2544_v18  ;;  %v2611_v32 = vor.u32 %v2862_v21, %v2608_v22  ;;  %v2568_v18 = vld [vmem:[#allocation7 + $0x388] sm:$0xf0] }
 0x32e   :  { %v732_v1 = vmul.f32 %v709_v59, %v3154_v19  ;;  %v733_v2 = vmul.f32 %v722_v60, %v3156_v26  ;;  %v685_v4 = vpop.f32.mrf.mxu0  ;;  %v698_v5 = vpop.f32.mrf.mxu1  ;;  %v2131_v19 = vor.u32 %v2742_v0, %v2128_v6  ;;  %v2195_v26 = vor.u32 %v2758_v7, %v2192_v10  ;;  %v2848_v7 = vld [vmem:[#allocation7 + $0x364] sm:$0xf]  ;;  %v2552_v10 = vld [vmem:[#allocation7 + $0x368] sm:$0xf0] }
 0x32f   :  { %1643 = vmatpush.bf16.msra.mxu2 %v2283_v62  ;;  %1656 = vmatpush.bf16.msra.mxu3 %v2347_v3  ;;  %v2788_v62 = vld [vmem:[#allocation7 + $0x184] sm:$0xf]  ;;  %v2312_v3 = vld [vmem:[#allocation7 + $0x188] sm:$0xf0]  ;;  %v2427_v59 = vor.u32 %v2816_v41, %v2424_v44  ;;  %v2491_v60 = vor.u32 %v2832_v51, %v2488_v47  ;;  %v2480_v4 = vld [vmem:[#allocation7 + $0x2d8] sm:$0xf0]  ;;  %v2563_v5 = vor.u32 %v2850_v55, %v2560_v56 }
 0x330   :  { %v3184_v20 = vpack.c.bf16 %v732_v1, %v732_v1  ;;  %v3186_v14 = vpack.c.bf16 %v733_v2, %v733_v2  ;;  %v2315_v0 = vor.u32 %v2788_v62, %v2312_v3  ;;  %v2416_v1 = vld [vmem:[#allocation7 + $0x258] sm:$0xf0]  ;;  %v2830_v2 = vld [vmem:[#allocation7 + $0x2d4] sm:$0xf]  ;;  %v2627_v6 = vor.u32 %v2866_v57, %v2624_v58  ;;  %v2456_v41 = vld [vmem:[#allocation7 + $0x2a8] sm:$0xf0] }
 0x331   :  { %1619 = vmatpush.bf16.msra.mxu0 %v2139_v61  ;;  %1632 = vmatpush.bf16.msra.mxu1 %v2203_v63  ;;  %v2814_v61 = vld [vmem:[#allocation7 + $0x254] sm:$0xf]  ;;  %v2251_v63 = vor.u32 %v2772_v48, %v2248_v54  ;;  %v2483_v25 = vor.u32 %v2830_v2, %v2480_v4  ;;  %v2592_v47 = vld [vmem:[#allocation7 + $0x3b8] sm:$0xf0]  ;;  %v2804_v2 = vld [vmem:[#allocation7 + $0x204] sm:$0xf] }
 0x332   :  { %1596 = vmatmul.bf16.vlgmr.msrb.gmra.mxu2 %v3184_v20  ;;  %1609 = vmatmul.bf16.vlgmr.msrb.gmra.mxu3 %v3186_v14  ;;  %v2419_v13 = vor.u32 %v2814_v61, %v2416_v1  ;;  %v2842_v51 = vld [vmem:[#allocation7 + $0x334] sm:$0xf]  ;;  %v2384_v3 = vld [vmem:[#allocation7 + $0x218] sm:$0xf0]  ;;  %v2856_v61 = vld [vmem:[#allocation7 + $0x3a4] sm:$0xf] }
 0x333   :  { %1644 = vmatpush.bf16.msra.mxu2 %v2275_v11  ;;  %1657 = vmatpush.bf16.msra.mxu3 %v2339_v12  ;;  %v2864_v11 = vld [vmem:[#allocation7 + $0x3e4] sm:$0xf]  ;;  %v2616_v12 = vld [vmem:[#allocation7 + $0x3e8] sm:$0xf0]  ;;  %v2806_v62 = vld [vmem:[#allocation7 + $0x214] sm:$0xf] }
 0x334   :  { %v2822_v55 = vld [vmem:[#allocation7 + $0x294] sm:$0xf]  ;;  %v2448_v56 = vld [vmem:[#allocation7 + $0x298] sm:$0xf0]  ;;  %v2376_v4 = vld [vmem:[#allocation7 + $0x208] sm:$0xf0] }
 0x335   :  { %1620 = vmatpush.bf16.msra.mxu0 %v2131_v19  ;;  %1633 = vmatpush.bf16.msra.mxu1 %v2195_v26  ;;  %v711_v35 = vpop.f32.mrf.mxu2  ;;  %v724_v36 = vpop.f32.mrf.mxu3  ;;  %v2828_v19 = vld [vmem:[#allocation7 + $0x2c4] sm:$0xf]  ;;  %v2472_v26 = vld [vmem:[#allocation7 + $0x2c8] sm:$0xf0]  ;;  %v2451_v1 = vor.u32 %v2822_v55, %v2448_v56  ;;  %v2379_v15 = vor.u32 %v2804_v2, %v2376_v4 }
 0x336   :  { %v2475_v24 = vor.u32 %v2828_v19, %v2472_v26  ;;  %v2860_v35 = vld [vmem:[#allocation7 + $0x3c4] sm:$0xf]  ;;  %v2600_v36 = vld [vmem:[#allocation7 + $0x3c8] sm:$0xf0] }
 0x337   :  { %1645 = vmatpush.bf16.msra.mxu2 %v2267_v27  ;;  %1658 = vmatpush.bf16.msra.mxu3 %v2331_v28  ;;  %v2810_v27 = vld [vmem:[#allocation7 + $0x234] sm:$0xf]  ;;  %v2400_v28 = vld [vmem:[#allocation7 + $0x238] sm:$0xf0]  ;;  %v2603_v44 = vor.u32 %v2860_v35, %v2600_v36  ;;  %v2852_v17 = vld [vmem:[#allocation7 + $0x384] sm:$0xf] }
 0x338   :  { %v2571_v22 = vor.u32 %v2852_v17, %v2568_v18 }
 0x339   :  { %1621 = vmatpush.bf16.msra.mxu0 %v2123_v37  ;;  %1634 = vmatpush.bf16.msra.mxu1 %v2187_v38  ;;  %v2403_v37 = vor.u32 %v2810_v27, %v2400_v28  ;;  %v2467_v38 = vor.u32 %v2826_v29, %v2464_v30  ;;  %v2873_v27 = vld [vmem:[#allocation8 + $0x28] sm:$0xff]  ;;  %v2872_v28 = vld [vmem:[#allocation8 + $0x20] sm:$0xff]  ;;  %v2871_v29 = vld [vmem:[#allocation8 + $0x18] sm:$0xff] }
 0x33a   :  { %v2870_v30 = vld [vmem:[#allocation8 + $0x10] sm:$0xff] }
 0x33b   :  { %1646 = vmatpush.bf16.msra.mxu2 %v2259_v52  ;;  %1659 = vmatpush.bf16.msra.mxu3 %v2323_v53  ;;  %v2528_v52 = vld [vmem:[#allocation7 + $0x338] sm:$0xf0]  ;;  %v2858_v53 = vld [vmem:[#allocation7 + $0x3b4] sm:$0xf] }
 0x33c   :  { %1622 = vmatmul.bf16.vlgmr.msra.gmra.mxu0 %v3160_v42  ;;  %1635 = vmatmul.bf16.vlgmr.msra.gmra.mxu1 %v3162_v43  ;;  %v2555_v42 = vor.u32 %v2848_v7, %v2552_v10  ;;  %v2619_v43 = vor.u32 %v2864_v11, %v2616_v12  ;;  %v2531_v57 = vor.u32 %v2842_v51, %v2528_v52  ;;  %v2838_v11 = vld [vmem:[#allocation7 + $0x314] sm:$0xf]  ;;  %v2512_v12 = vld [vmem:[#allocation7 + $0x318] sm:$0xf0]  ;;  %v242_v51 = vld [vmem:[#allocation10 + $0x2] sm:$0x3] }
 0x33d   :  { %1666 = vmatpush.bf16.msrb.mxu0 %v2435_v39  ;;  %1679 = vmatpush.bf16.msrb.mxu1 %v2499_v40  ;;  %v2808_v39 = vld [vmem:[#allocation7 + $0x224] sm:$0xf]  ;;  %v2392_v40 = vld [vmem:[#allocation7 + $0x228] sm:$0xf0]  ;;  %v2595_v58 = vor.u32 %v2858_v53, %v2592_v47  ;;  %v2515_v19 = vor.u32 %v2838_v11, %v2512_v12  ;;  %v244_v47 = vperm.slane %v242_v51, 0 }
 0x33e   :  { %v2395_v48 = vor.u32 %v2808_v39, %v2392_v40  ;;  %v2883_v40 = vld [vmem:[#allocation8 + $0x78] sm:$0xff]  ;;  %v2876_v12 = vld [vmem:[#allocation8 + $0x40] sm:$0xff] }
 0x33f   :  { %1647 = vmatpush.bf16.msra.mxu2 %v2251_v63  ;;  %1660 = vmatpush.bf16.msra.mxu3 %v2315_v0  ;;  %v2584_v63 = vld [vmem:[#allocation7 + $0x3a8] sm:$0xf0]  ;;  %v2387_v0 = vor.u32 %v2806_v62, %v2384_v3  ;;  %v301_v56 = vadd.f32 %v3138_v49, %v244_v47 }
 0x340   :  { %v2587_v10 = vor.u32 %v2856_v61, %v2584_v63 }
 0x341   :  { %1667 = vmatpush.bf16.msrb.mxu0 %v2427_v59  ;;  %1680 = vmatpush.bf16.msrb.mxu1 %v2491_v60  ;;  %v2840_v59 = vld [vmem:[#allocation7 + $0x324] sm:$0xf]  ;;  %v2520_v60 = vld [vmem:[#allocation7 + $0x328] sm:$0xf0] }
 0x342   :  { %1648 = vmatmul.bf16.vlgmr.msra.gmra.mxu2 %v3168_v8  ;;  %1661 = vmatmul.bf16.vlgmr.msra.gmra.mxu3 %v3170_v9  ;;  %v2824_v8 = vld [vmem:[#allocation7 + $0x2a4] sm:$0xf]  ;;  %v2539_v9 = vor.u32 %v2844_v33, %v2536_v34  ;;  %v2523_v7 = vor.u32 %v2840_v59, %v2520_v60 }
 0x343   :  { %1692 = vmatpush.bf16.msrb.mxu2 %v2563_v5  ;;  %1705 = vmatpush.bf16.msrb.mxu3 %v2627_v6  ;;  %v2459_v54 = vor.u32 %v2824_v8, %v2456_v41  ;;  %v2820_v5 = vld [vmem:[#allocation7 + $0x284] sm:$0xf]  ;;  %v2440_v6 = vld [vmem:[#allocation7 + $0x288] sm:$0xf0] }
 0x344   :  { %v2443_v16 = vor.u32 %v2820_v5, %v2440_v6  ;;  %v2878_v5 = vld [vmem:[#allocation8 + $0x50] sm:$0xff] }
 0x345   :  { %1668 = vmatpush.bf16.msrb.mxu0 %v2419_v13  ;;  %1681 = vmatpush.bf16.msrb.mxu1 %v2483_v25  ;;  %v2854_v13 = vld [vmem:[#allocation7 + $0x394] sm:$0xf]  ;;  %v2576_v25 = vld [vmem:[#allocation7 + $0x398] sm:$0xf0] }
 0x346   :  { %v2579_v26 = vor.u32 %v2854_v13, %v2576_v25 }
 0x347   :  { %1693 = vmatpush.bf16.msrb.mxu2 %v2555_v42  ;;  %1706 = vmatpush.bf16.msrb.mxu3 %v2619_v43  ;;  %v2836_v42 = vld [vmem:[#allocation7 + $0x304] sm:$0xf]  ;;  %v2504_v43 = vld [vmem:[#allocation7 + $0x308] sm:$0xf0] }
 0x348   :  { %v2507_v21 = vor.u32 %v2836_v42, %v2504_v43 }
 0x349   :  { %1669 = vmatpush.bf16.msrb.mxu0 %v2411_v23  ;;  %1682 = vmatpush.bf16.msrb.mxu1 %v2475_v24  ;;  %v2875_v23 = vld [vmem:[#allocation8 + $0x38] sm:$0xff]  ;;  %v2874_v24 = vld [vmem:[#allocation8 + $0x30] sm:$0xff] }
 0x34b   :  { %1694 = vmatpush.bf16.msrb.mxu2 %v2547_v31  ;;  %1707 = vmatpush.bf16.msrb.mxu3 %v2611_v32  ;;  %v2869_v31 = vld [vmem:[#allocation8 + $0x8] sm:$0xff]  ;;  %v2868_v32 = vld [vmem:[#allocation8] sm:$0xff] }
 0x34d   :  { %1670 = vmatpush.bf16.msrb.mxu0 %v2403_v37  ;;  %1683 = vmatpush.bf16.msrb.mxu1 %v2467_v38 }
 0x34f   :  { %1695 = vmatpush.bf16.msrb.mxu2 %v2539_v9  ;;  %1708 = vmatpush.bf16.msrb.mxu3 %v2603_v44  ;;  %v2882_v9 = vld [vmem:[#allocation8 + $0x70] sm:$0xff] }
 0x351   :  { %1671 = vmatpush.bf16.msrb.mxu0 %v2395_v48  ;;  %1684 = vmatpush.bf16.msrb.mxu1 %v2459_v54  ;;  %v2881_v54 = vld [vmem:[#allocation8 + $0x68] sm:$0xff] }
 0x353   :  { %1696 = vmatpush.bf16.msrb.mxu2 %v2531_v57  ;;  %1709 = vmatpush.bf16.msrb.mxu3 %v2595_v58  ;;  %v2880_v58 = vld [vmem:[#allocation8 + $0x60] sm:$0xff] }
 0x355   :  { %1672 = vmatpush.bf16.msrb.mxu0 %v2387_v0  ;;  %1685 = vmatpush.bf16.msrb.mxu1 %v2451_v1  ;;  %v2879_v0 = vld [vmem:[#allocation8 + $0x58] sm:$0xff] }
 0x357   :  { %1697 = vmatpush.bf16.msrb.mxu2 %v2523_v7  ;;  %1710 = vmatpush.bf16.msrb.mxu3 %v2587_v10  ;;  %v2877_v10 = vld [vmem:[#allocation8 + $0x48] sm:$0xff] }
 0x359   :  { %1673 = vmatpush.bf16.msrb.mxu0 %v2379_v15  ;;  %1686 = vmatpush.bf16.msrb.mxu1 %v2443_v16 }
 0x35b   :  { %1698 = vmatpush.bf16.msrb.mxu2 %v2515_v19  ;;  %1711 = vmatpush.bf16.msrb.mxu3 %v2579_v26 }
 0x35c   :  { %1674 = vmatmul.bf16.vlgmr.msrb.gmra.mxu0 %v3176_v45  ;;  %1687 = vmatmul.bf16.vlgmr.msrb.gmra.mxu1 %v3178_v46 }
 0x35d   :  { %1856 = vmatpush.bf16.msra.mxu0 %v2875_v23  ;;  %1869 = vmatpush.bf16.msra.mxu1 %v2883_v40 }
 0x35f   :  { %1699 = vmatpush.bf16.msrb.mxu2 %v2507_v21  ;;  %1712 = vmatpush.bf16.msrb.mxu3 %v2571_v22  ;;  %v245_v21 = vperm.slane %v242_v51, 1 }
 0x361   :  { %1857 = vmatpush.bf16.msra.mxu0 %v2874_v24  ;;  %1870 = vmatpush.bf16.msra.mxu1 %v2882_v9 }
 0x362   :  { %1700 = vmatmul.bf16.vlgmr.msrb.gmra.mxu2 %v3184_v20  ;;  %1713 = vmatmul.bf16.vlgmr.msrb.gmra.mxu3 %v3186_v14 }
 0x365   :  { %1858 = vmatpush.bf16.msra.mxu0 %v2873_v27  ;;  %1871 = vmatpush.bf16.msra.mxu1 %v2881_v54 }
 0x369   :  { %1859 = vmatpush.bf16.msra.mxu0 %v2872_v28  ;;  %1872 = vmatpush.bf16.msra.mxu1 %v2880_v58  ;;  %v314_v28 = vadd.f32 %v3142_v50, %v245_v21 }
 0x36d   :  { %1860 = vmatpush.bf16.msra.mxu0 %v2871_v29  ;;  %1873 = vmatpush.bf16.msra.mxu1 %v2879_v0 }
 0x371   :  { %1861 = vmatpush.bf16.msra.mxu0 %v2870_v30  ;;  %1874 = vmatpush.bf16.msra.mxu1 %v2878_v5 }
 0x375   :  { %1862 = vmatpush.bf16.msra.mxu0 %v2869_v31  ;;  %1875 = vmatpush.bf16.msra.mxu1 %v2877_v10 }
 0x379   :  { %1863 = vmatpush.bf16.msra.mxu0 %v2868_v32  ;;  %1876 = vmatpush.bf16.msra.mxu1 %v2876_v12 }
 0x398   :  { %v1519_v45 = vpop.f32.mrf.mxu0  ;;  %v1532_v46 = vpop.f32.mrf.mxu1 }
 0x399   :  { %v1533_v35 = vadd.f32 %v1532_v46, %v1519_v45 }
 0x3a0   :  { %v1521_v20 = vpop.f32.mrf.mxu0  ;;  %v1534_v14 = vpop.f32.mrf.mxu1 }
 0x3a5   :  { %v1545_v33 = vpop.f32.mrf.mxu2  ;;  %v1558_v34 = vpop.f32.mrf.mxu3 }
 0x3a6   :  { %v1546_v36 = vadd.f32 %v1545_v33, %v1533_v35  ;;  %v2899_v33 = vld [vmem:[#allocation10 + $0x4] ss:$0 sm:$0xff] }
 0x3a8   :  { %v1559_v39 = vadd.f32 %v1558_v34, %v1546_v36 }
 0x3a9   :  { %v1571_v37 = vpop.f32.mrf.mxu0  ;;  %v1584_v38 = vpop.f32.mrf.mxu1 }
 0x3aa   :  { %v1572_v44 = vadd.f32 %v1571_v37, %v1559_v39 }
 0x3ac   :  { %v1585_v48 = vadd.f32 %v1584_v38, %v1572_v44 }
 0x3ad   :  { %v1547_v8 = vpop.f32.mrf.mxu2  ;;  %v1560_v41 = vpop.f32.mrf.mxu3 }
 0x3b1   :  { %v1573_v52 = vpop.f32.mrf.mxu0  ;;  %v1586_v53 = vpop.f32.mrf.mxu1 }
 0x3b5   :  { %v1597_v62 = vpop.f32.mrf.mxu2  ;;  %v1610_v3 = vpop.f32.mrf.mxu3 }
 0x3b6   :  { %v1598_v55 = vadd.f32 %v1597_v62, %v1585_v48 }
 0x3b8   :  { %v1611_v57 = vadd.f32 %v1610_v3, %v1598_v55 }
 0x3b9   :  { %v1623_v59 = vpop.f32.mrf.mxu0  ;;  %v1636_v60 = vpop.f32.mrf.mxu1 }
 0x3ba   :  { %v1718_v61 = vadd.f32 %v1611_v57, %v301_v56  ;;  %v1637_v15 = vadd.f32 %v1636_v60, %v1623_v59 }
 0x3bc   :  { %v1720_v63 = vmax.f32 %v1718_v61, 0.0 }
 0x3bd   :  { %v1599_v1 = vpop.f32.mrf.mxu2  ;;  %v1612_v2 = vpop.f32.mrf.mxu3 }
 0x3be   :  { %v1754_v4 = vpack.c.bf16 %v1720_v63, %v1720_v63 }
 0x3c0   :  { %1864 = vmatmul.bf16.vlgmr.msra.gmra.mxu0 %v1754_v4 }
 0x3c1   :  { %v1625_v6 = vpop.f32.mrf.mxu0  ;;  %v1638_v7 = vpop.f32.mrf.mxu1 }
 0x3c5   :  { %v1649_v11 = vpop.f32.mrf.mxu2  ;;  %v1662_v49 = vpop.f32.mrf.mxu3 }
 0x3c6   :  { %v1650_v26 = vadd.f32 %v1649_v11, %v1637_v15 }
 0x3c8   :  { %v1663_v42 = vadd.f32 %v1662_v49, %v1650_v26 }
 0x3cd   :  { %v1651_v13 = vpop.f32.mrf.mxu2  ;;  %v1664_v25 = vpop.f32.mrf.mxu3 }
 0x3d9   :  { %v1675_v16 = vpop.f32.mrf.mxu0  ;;  %v1688_v19 = vpop.f32.mrf.mxu1 }
 0x3da   :  { %v1676_v43 = vadd.f32 %v1675_v16, %v1663_v42 }
 0x3dc   :  { %v1689_v22 = vadd.f32 %v1688_v19, %v1676_v43 }
 0x3e1   :  { %v1677_v17 = vpop.f32.mrf.mxu0  ;;  %v1690_v18 = vpop.f32.mrf.mxu1 }
 0x3e5   :  { %v1701_v23 = vpop.f32.mrf.mxu2  ;;  %v1714_v24 = vpop.f32.mrf.mxu3 }
 0x3e6   :  { %v1702_v27 = vadd.f32 %v1701_v23, %v1689_v22 }
 0x3e8   :  { %v1715_v29 = vadd.f32 %v1714_v24, %v1702_v27 }
 0x3ea   :  { %v1719_v30 = vadd.f32 %v1715_v29, %v314_v28 }
 0x3ec   :  { %v1721_v45 = vmax.f32 %v1719_v30, 0.0 }
 0x3ed   :  { %v1703_v46 = vpop.f32.mrf.mxu2  ;;  %v1716_v31 = vpop.f32.mrf.mxu3 }
 0x3ee   :  { %v1755_v32 = vpack.c.bf16 %v1721_v45, %v1721_v45 }
 0x3f0   :  { %1877 = vmatmul.bf16.vlgmr.msra.gmra.mxu1 %v1755_v32 }
 0x43d   :  { %v1865_v20 = vpop.f32.mrf.mxu0 }
 0x43e   :  { %v1866_v34 = vadd.f32 %v2899_v33, %v1865_v20 }
 0x445   :  { %v1867_v14 = vpop.f32.mrf.mxu0 }
 0x46d   :  { %v1878_v35 = vpop.f32.mrf.mxu1 }
 0x46e   :  { %v1879_v36 = vadd.f32 %v1878_v35, %v1866_v34 }
 0x470   :  { %v1882_v50 = vmax.f32 %v1879_v36, 0.0 }
 0x472   :  { %1883 = vst [vmem:[#allocation11] sm:$0xff] %v1882_v50 }
 0x473   :  { %1894 = dma.vmem_to_hbm [thread:$0]  %s1890_s21, 128, %s1892_s24, [#allocation4]  }
 0x475   :  { %v1880_v37 = vpop.f32.mrf.mxu1 }
 0x476   :  { %3054 = dma.done.wait [#allocation4], 128  }
 0x477   :  { %3055 = vsyncadd [#allocation4], 4294967168 }
 0x478   :  { %1899 = vsyncpa [#allocation3], 1 }
 0x479   :  { %1900 = vsyncpa [#allocation6], 1 }
 0x47a   :  { %1901 = vsyncpa [#allocation9], 1 }
 0x47b   :  { %1902 = vsyncpa [#allocation4], 1 }

</bundles_post_ra>
